<compile_context>
chip_gen: v7x
topology: tpu7x:2x2x1
jax: 0.10.0
libtpu: 0.0.40
codegen_flags: <defaults>
</compile_context>

<pallas_src>
import jax
import jax.numpy as jnp
from jax import lax
from jax.experimental import pallas as pl
from jax.experimental.pallas import tpu as pltpu

# ---------------- config (mirrors the PyTorch `config`) ----------------
VOCAB = 64          # rozmiar_slownika
BLOCK_SIZE = 8      # config.rozmiar_bloku  (T)
ATTRS = 32          # config.atrybuty       (C)
N_HEADS = 4         # config.kanaly_uwagi
N_LAYERS = 2        # config.warstwy
HEAD_DIM = ATTRS // N_HEADS
LN_EPS = 1e-5

N_LAYER_PARAMS = 13
N_HEAD_PARAMS = 4


def _layernorm(x, g, b, eps=LN_EPS):
    mu = jnp.mean(x, axis=-1, keepdims=True)
    var = jnp.mean((x - mu) ** 2, axis=-1, keepdims=True)
    return (x - mu) * lax.rsqrt(var + eps) * g + b


def _split_heads(x):
    # (BT, C) -> (H, BT, HEAD_DIM); columns of x are already grouped per head.
    return jnp.stack(
        [x[:, h * HEAD_DIM:(h + 1) * HEAD_DIM] for h in range(N_HEADS)], axis=0)


# ---------------- single fused forward kernel ----------------
def fwd_kernel(*refs):
    """refs = (x_flat, attn_bias, *layer_params x N_LAYERS, *head_params, out).

    x_flat:    (B*T, C) f32 activations (batch folded into the matmul M dimension)
    attn_bias: (B*T, B*T) f32, 0 where attention allowed, -1e30 otherwise
               (block-diagonal per batch element AND causal), hoisted out of the kernel.
    out:       (B*T, VOCAB) f32 logits
    """
    x_ref, bias_ref = refs[0], refs[1]
    out_ref = refs[-1]
    prm = refs[2:-1]

    x = x_ref[...]                       # (BT, C) f32
    bias = bias_ref[...]                 # (BT, BT) f32
    scale = jnp.float32(HEAD_DIM ** -0.5)

    idx = 0
    for _ in range(N_LAYERS):
        (ln1g, ln1b, wq, wk, wv, wproj, bproj,
         ln2g, ln2b, w1, b1, w2, b2) = prm[idx:idx + N_LAYER_PARAMS]
        idx += N_LAYER_PARAMS

        # ---- LN1 + multi-head causal self-attention (heads batched) ----
        xn = _layernorm(x, ln1g[...], ln1b[...])
        xb = xn.astype(jnp.bfloat16)                  # bf16 MXU operands, f32 accum
        q = jnp.dot(xb, wq[...], preferred_element_type=jnp.float32)   # (BT, C)
        k = jnp.dot(xb, wk[...], preferred_element_type=jnp.float32)
        v = jnp.dot(xb, wv[...], preferred_element_type=jnp.float32)

        qh = _split_heads(q).astype(jnp.bfloat16)     # (H, BT, HEAD_DIM)
        kh = _split_heads(k).astype(jnp.bfloat16)
        vh = _split_heads(v).astype(jnp.bfloat16)

        s = jnp.einsum('hqd,hkd->hqk', qh, kh,
                       preferred_element_type=jnp.float32)             # (H, BT, BT)
        s = s * scale + bias[None, :, :]
        # numerically-stable softmax over last dim (VPU f32; reciprocal on the EUP)
        s = s - jnp.max(s, axis=-1, keepdims=True)
        e = jnp.exp(s)
        p = e * pl.reciprocal(jnp.sum(e, axis=-1, keepdims=True), approx=True)
        oh = jnp.einsum('hqk,hkd->hqd', p.astype(jnp.bfloat16), vh,
                        preferred_element_type=jnp.float32)            # (H, BT, HD)
        att = jnp.concatenate([oh[h] for h in range(N_HEADS)], axis=-1)  # (BT, C)

        sa = jnp.dot(att.astype(jnp.bfloat16), wproj[...],
                     preferred_element_type=jnp.float32) + bproj[...]
        x = x + sa                                    # residual 1

        # ---- LN2 + FeedForward (Linear -> ReLU -> Linear) ----
        xn2 = _layernorm(x, ln2g[...], ln2b[...])
        h1 = jnp.maximum(
            jnp.dot(xn2.astype(jnp.bfloat16), w1[...],
                    preferred_element_type=jnp.float32) + b1[...], 0.0)
        ff = jnp.dot(h1.astype(jnp.bfloat16), w2[...],
                     preferred_element_type=jnp.float32) + b2[...]
        x = x + ff                                    # residual 2

    # ---- final LayerNorm + vocab projection ----
    lnfg, lnfb, wout, bout = prm[idx:idx + N_HEAD_PARAMS]
    xn = _layernorm(x, lnfg[...], lnfb[...])
    out_ref[...] = jnp.dot(xn.astype(jnp.bfloat16), wout[...],
                           preferred_element_type=jnp.float32) + bout[...]


# ---------------- host-side glue ----------------
def _block_causal_bias(B, T):
    """(B*T, B*T) additive bias: 0 where (same batch element AND causal), -1e30 else."""
    pos = jnp.arange(B * T, dtype=jnp.int32)
    b = pos // T
    t = pos % T
    allowed = (b[:, None] == b[None, :]) & (t[:, None] >= t[None, :])
    return jnp.where(allowed, 0.0, -1e30).astype(jnp.float32)


@jax.jit
def _forward_logits(params, idx):
    B, T = idx.shape
    # embedding gathers are plain-JAX glue (data-dependent row gather)
    x = params["tok_emb"][idx] + params["pos_emb"][:T][None, :, :]   # (B, T, C) f32
    x = x.reshape(B * T, ATTRS).astype(jnp.float32)
    bias = _block_causal_bias(B, T)

    flat = [x, bias]
    for layer in params["layers"]:
        flat += list(layer)
    flat += [params["ln_f_g"], params["ln_f_b"], params["w_out"], params["b_out"]]

    vmem = pl.BlockSpec(memory_space=pltpu.MemorySpace.VMEM)
    logits_flat = pl.pallas_call(
        fwd_kernel,
        out_shape=jax.ShapeDtypeStruct((B * T, VOCAB), jnp.float32),
        in_specs=[vmem] * len(flat),
        out_specs=vmem,
    )(*flat)
    return logits_flat.reshape(B, T, VOCAB)


def llmodel_forward(params, idx, targets=None):
    """Matches LLModel.forward: returns (logits, loss). loss is None if targets is None."""
    logits = _forward_logits(params, idx)
    if targets is None:
        return logits, None
    lf = logits.reshape(-1, VOCAB)
    tf = targets.reshape(-1)
    logz = jax.nn.logsumexp(lf, axis=-1)
    nll = logz - jnp.take_along_axis(lf, tf[:, None], axis=-1)[:, 0]
    return logits, jnp.mean(nll)


# ---------------- pure-JAX reference (same dtype regime, for correctness check) ------
def forward_reference(params, idx):
    B, T = idx.shape
    x = (params["tok_emb"][idx] + params["pos_emb"][:T][None, :, :]).reshape(B * T, ATTRS)
    x = x.astype(jnp.float32)
    bias = _block_causal_bias(B, T)
    scale = jnp.float32(HEAD_DIM ** -0.5)
    for layer in params["layers"]:
        (ln1g, ln1b, wq, wk, wv, wproj, bproj,
         ln2g, ln2b, w1, b1, w2, b2) = layer
        xn = _layernorm(x, ln1g, ln1b)
        xb = xn.astype(jnp.bfloat16)
        q = jnp.dot(xb, wq, preferred_element_type=jnp.float32)
        k = jnp.dot(xb, wk, preferred_element_type=jnp.float32)
        v = jnp.dot(xb, wv, preferred_element_type=jnp.float32)
        qh = _split_heads(q).astype(jnp.bfloat16)
        kh = _split_heads(k).astype(jnp.bfloat16)
        vh = _split_heads(v).astype(jnp.bfloat16)
        s = jnp.einsum('hqd,hkd->hqk', qh, kh,
                       preferred_element_type=jnp.float32) * scale + bias[None, :, :]
        p = jax.nn.softmax(s, axis=-1)
        oh = jnp.einsum('hqk,hkd->hqd', p.astype(jnp.bfloat16), vh,
                        preferred_element_type=jnp.float32)
        att = jnp.concatenate([oh[h] for h in range(N_HEADS)], axis=-1)
        x = x + jnp.dot(att.astype(jnp.bfloat16), wproj,
                        preferred_element_type=jnp.float32) + bproj
        xn2 = _layernorm(x, ln2g, ln2b)
        h1 = jnp.maximum(jnp.dot(xn2.astype(jnp.bfloat16), w1,
                                 preferred_element_type=jnp.float32) + b1, 0.0)
        x = x + jnp.dot(h1.astype(jnp.bfloat16), w2,
                        preferred_element_type=jnp.float32) + b2
    xn = _layernorm(x, params["ln_f_g"], params["ln_f_b"])
    logits = jnp.dot(xn.astype(jnp.bfloat16), params["w_out"],
                     preferred_element_type=jnp.float32) + params["b_out"]
    return logits.reshape(B, T, VOCAB)


# ---------------- parameter construction (deterministic, synthetic) ----------------
def init_params(key):
    def nrm(k, shape, dtype=jnp.bfloat16, scale=0.02):
        # matmul weights stored bf16 (MXU-native, halves VMEM/DMA);
        # embeddings / LN params / biases stay f32.
        return (scale * jax.random.normal(k, shape, dtype=jnp.float32)).astype(dtype)

    keys = jax.random.split(key, 4 + N_LAYERS)
    params = {
        "tok_emb": nrm(keys[0], (VOCAB, ATTRS), jnp.float32),
        "pos_emb": nrm(keys[1], (BLOCK_SIZE, ATTRS), jnp.float32),
        "ln_f_g": jnp.ones((1, ATTRS), jnp.float32),
        "ln_f_b": jnp.zeros((1, ATTRS), jnp.float32),
        "w_out": nrm(keys[2], (ATTRS, VOCAB)),
        "b_out": jnp.zeros((1, VOCAB), jnp.float32),
        "layers": [],
    }
    for i in range(N_LAYERS):
        lk = jax.random.split(keys[4 + i], 6)
        layer = [
            jnp.ones((1, ATTRS), jnp.float32),          # ln1 gamma
            jnp.zeros((1, ATTRS), jnp.float32),         # ln1 beta
            nrm(lk[0], (ATTRS, ATTRS)),                 # Wq (heads concatenated)
            nrm(lk[1], (ATTRS, ATTRS)),                 # Wk
            nrm(lk[2], (ATTRS, ATTRS)),                 # Wv
            nrm(lk[3], (ATTRS, ATTRS)),                 # Wproj
            jnp.zeros((1, ATTRS), jnp.float32),         # bproj
            jnp.ones((1, ATTRS), jnp.float32),          # ln2 gamma
            jnp.zeros((1, ATTRS), jnp.float32),         # ln2 beta
            nrm(lk[4], (ATTRS, 4 * ATTRS)),             # W1
            jnp.zeros((1, 4 * ATTRS), jnp.float32),     # b1
            nrm(lk[5], (4 * ATTRS, ATTRS)),             # W2
            jnp.zeros((1, ATTRS), jnp.float32),         # b2
        ]
        params["layers"].append(layer)
    return params


if __name__ == "__main__":
    key = jax.random.PRNGKey(0)
    pkey, ikey, tkey = jax.random.split(key, 3)
    params = init_params(pkey)

    B, T = 2, BLOCK_SIZE
    idx = jax.random.randint(ikey, (B, T), 0, VOCAB, dtype=jnp.int32)
    targets = jax.random.randint(tkey, (B, T), 0, VOCAB, dtype=jnp.int32)

    # inference path (targets=None -> loss is None)
    logits, loss = llmodel_forward(params, idx)
    logits = jax.block_until_ready(logits)
    assert logits.shape == (B, T, VOCAB), logits.shape
    assert loss is None
    assert bool(jnp.all(jnp.isfinite(logits)))

    # correctness vs a pure-JAX reference in the same dtype regime
    ref = jax.block_until_ready(forward_reference(params, idx))
    max_err = float(jnp.max(jnp.abs(logits - ref)))
    assert bool(jnp.allclose(logits, ref, atol=2e-2, rtol=2e-2)), max_err

    # training path (cross-entropy loss on the kernel's logits)
    _, loss2 = llmodel_forward(params, idx, targets)
    loss2 = jax.block_until_ready(loss2)
    assert bool(jnp.isfinite(loss2))

    print("KERNEL_OK")
</pallas_src>

<mosaic_0001>
module attributes {stable_mosaic.version = 11 : i64} {
  func.func @fwd_kernel(%arg0: memref<16x32xf32, #tpu.memory_space<vmem>>, %arg1: memref<16x16xf32, #tpu.memory_space<vmem>>, %arg2: memref<1x32xf32, #tpu.memory_space<vmem>>, %arg3: memref<1x32xf32, #tpu.memory_space<vmem>>, %arg4: memref<32x32xbf16, #tpu.memory_space<vmem>>, %arg5: memref<32x32xbf16, #tpu.memory_space<vmem>>, %arg6: memref<32x32xbf16, #tpu.memory_space<vmem>>, %arg7: memref<32x32xbf16, #tpu.memory_space<vmem>>, %arg8: memref<1x32xf32, #tpu.memory_space<vmem>>, %arg9: memref<1x32xf32, #tpu.memory_space<vmem>>, %arg10: memref<1x32xf32, #tpu.memory_space<vmem>>, %arg11: memref<32x128xbf16, #tpu.memory_space<vmem>>, %arg12: memref<1x128xf32, #tpu.memory_space<vmem>>, %arg13: memref<128x32xbf16, #tpu.memory_space<vmem>>, %arg14: memref<1x32xf32, #tpu.memory_space<vmem>>, %arg15: memref<1x32xf32, #tpu.memory_space<vmem>>, %arg16: memref<1x32xf32, #tpu.memory_space<vmem>>, %arg17: memref<32x32xbf16, #tpu.memory_space<vmem>>, %arg18: memref<32x32xbf16, #tpu.memory_space<vmem>>, %arg19: memref<32x32xbf16, #tpu.memory_space<vmem>>, %arg20: memref<32x32xbf16, #tpu.memory_space<vmem>>, %arg21: memref<1x32xf32, #tpu.memory_space<vmem>>, %arg22: memref<1x32xf32, #tpu.memory_space<vmem>>, %arg23: memref<1x32xf32, #tpu.memory_space<vmem>>, %arg24: memref<32x128xbf16, #tpu.memory_space<vmem>>, %arg25: memref<1x128xf32, #tpu.memory_space<vmem>>, %arg26: memref<128x32xbf16, #tpu.memory_space<vmem>>, %arg27: memref<1x32xf32, #tpu.memory_space<vmem>>, %arg28: memref<1x32xf32, #tpu.memory_space<vmem>>, %arg29: memref<1x32xf32, #tpu.memory_space<vmem>>, %arg30: memref<32x64xbf16, #tpu.memory_space<vmem>>, %arg31: memref<1x64xf32, #tpu.memory_space<vmem>>, %arg32: memref<16x64xf32, #tpu.memory_space<vmem>>) attributes {dimension_semantics = [], scalar_prefetch = 0 : i64, scratch_operands = 0 : i64, tpu.core_type = #tpu.core_type<tc>} {
    %c0 = arith.constant 0 : index
    %c0_0 = arith.constant 0 : index
    %0 = vector.load %arg0[%c0, %c0_0] : memref<16x32xf32, #tpu.memory_space<vmem>>, vector<16x32xf32>
    %c0_1 = arith.constant 0 : index
    %c0_2 = arith.constant 0 : index
    %1 = vector.load %arg1[%c0_1, %c0_2] : memref<16x16xf32, #tpu.memory_space<vmem>>, vector<16x16xf32>
    %c0_3 = arith.constant 0 : index
    %c0_4 = arith.constant 0 : index
    %2 = vector.load %arg2[%c0_3, %c0_4] : memref<1x32xf32, #tpu.memory_space<vmem>>, vector<1x32xf32>
    %c0_5 = arith.constant 0 : index
    %c0_6 = arith.constant 0 : index
    %3 = vector.load %arg3[%c0_5, %c0_6] : memref<1x32xf32, #tpu.memory_space<vmem>>, vector<1x32xf32>
    %cst = arith.constant dense<0.000000e+00> : vector<16xf32>
    %4 = vector.multi_reduction <add>, %0, %cst [1] : vector<16x32xf32> to vector<16xf32>
    %5 = vector.shape_cast %4 : vector<16xf32> to vector<16x1xf32>
    %cst_7 = arith.constant 3.200000e+01 : f32
    %6 = vector.broadcast %cst_7 : f32 to vector<16x1xf32>
    %7 = arith.divf %5, %6 : vector<16x1xf32>
    %8 = vector.broadcast %7 : vector<16x1xf32> to vector<16x32xf32>
    %9 = arith.subf %0, %8 : vector<16x32xf32>
    %10 = arith.mulf %9, %9 : vector<16x32xf32>
    %cst_8 = arith.constant dense<0.000000e+00> : vector<16xf32>
    %11 = vector.multi_reduction <add>, %10, %cst_8 [1] : vector<16x32xf32> to vector<16xf32>
    %12 = vector.shape_cast %11 : vector<16xf32> to vector<16x1xf32>
    %cst_9 = arith.constant 3.200000e+01 : f32
    %13 = vector.broadcast %cst_9 : f32 to vector<16x1xf32>
    %14 = arith.divf %12, %13 : vector<16x1xf32>
    %15 = vector.broadcast %7 : vector<16x1xf32> to vector<16x32xf32>
    %16 = arith.subf %0, %15 : vector<16x32xf32>
    %cst_10 = arith.constant 9.99999974E-6 : f32
    %17 = vector.broadcast %cst_10 : f32 to vector<16x1xf32>
    %18 = arith.addf %14, %17 : vector<16x1xf32>
    %19 = math.rsqrt %18 : vector<16x1xf32>
    %20 = vector.broadcast %19 : vector<16x1xf32> to vector<16x32xf32>
    %21 = arith.mulf %16, %20 : vector<16x32xf32>
    %22 = vector.broadcast %2 : vector<1x32xf32> to vector<16x32xf32>
    %23 = arith.mulf %21, %22 : vector<16x32xf32>
    %24 = vector.broadcast %3 : vector<1x32xf32> to vector<16x32xf32>
    %25 = arith.addf %23, %24 : vector<16x32xf32>
    %26 = arith.truncf %25 : vector<16x32xf32> to vector<16x32xbf16>
    %c0_11 = arith.constant 0 : index
    %c0_12 = arith.constant 0 : index
    %27 = vector.load %arg4[%c0_11, %c0_12] : memref<32x32xbf16, #tpu.memory_space<vmem>>, vector<32x32xbf16>
    %cst_13 = arith.constant dense<0.000000e+00> : vector<16x32xf32>
    %28 = tpu.matmul %26, %27, %cst_13 {dimension_numbers = #tpu.dot_dimension_numbers<[1], [0], [0], [1], [0, 0, 1, 1], [], []>} : vector<16x32xbf16>, vector<32x32xbf16>, vector<16x32xf32> -> vector<16x32xf32>
    %c0_14 = arith.constant 0 : index
    %c0_15 = arith.constant 0 : index
    %29 = vector.load %arg5[%c0_14, %c0_15] : memref<32x32xbf16, #tpu.memory_space<vmem>>, vector<32x32xbf16>
    %cst_16 = arith.constant dense<0.000000e+00> : vector<16x32xf32>
    %30 = tpu.matmul %26, %29, %cst_16 {dimension_numbers = #tpu.dot_dimension_numbers<[1], [0], [0], [1], [0, 0, 1, 1], [], []>} : vector<16x32xbf16>, vector<32x32xbf16>, vector<16x32xf32> -> vector<16x32xf32>
    %c0_17 = arith.constant 0 : index
    %c0_18 = arith.constant 0 : index
    %31 = vector.load %arg6[%c0_17, %c0_18] : memref<32x32xbf16, #tpu.memory_space<vmem>>, vector<32x32xbf16>
    %cst_19 = arith.constant dense<0.000000e+00> : vector<16x32xf32>
    %32 = tpu.matmul %26, %31, %cst_19 {dimension_numbers = #tpu.dot_dimension_numbers<[1], [0], [0], [1], [0, 0, 1, 1], [], []>} : vector<16x32xbf16>, vector<32x32xbf16>, vector<16x32xf32> -> vector<16x32xf32>
    %33 = vector.extract_strided_slice %28 {offsets = [0, 0], sizes = [16, 8], strides = [1, 1]} : vector<16x32xf32> to vector<16x8xf32>
    %34 = vector.extract_strided_slice %28 {offsets = [0, 8], sizes = [16, 8], strides = [1, 1]} : vector<16x32xf32> to vector<16x8xf32>
    %35 = vector.extract_strided_slice %28 {offsets = [0, 16], sizes = [16, 8], strides = [1, 1]} : vector<16x32xf32> to vector<16x8xf32>
    %36 = vector.extract_strided_slice %28 {offsets = [0, 24], sizes = [16, 8], strides = [1, 1]} : vector<16x32xf32> to vector<16x8xf32>
    %37 = vector.shape_cast %33 : vector<16x8xf32> to vector<1x16x8xf32>
    %38 = vector.shape_cast %34 : vector<16x8xf32> to vector<1x16x8xf32>
    %39 = vector.shape_cast %35 : vector<16x8xf32> to vector<1x16x8xf32>
    %40 = vector.shape_cast %36 : vector<16x8xf32> to vector<1x16x8xf32>
    %41 = tpu.concatenate %37, %38, %39, %40 in 0 : vector<1x16x8xf32>, vector<1x16x8xf32>, vector<1x16x8xf32>, vector<1x16x8xf32> -> vector<4x16x8xf32>
    %42 = arith.truncf %41 : vector<4x16x8xf32> to vector<4x16x8xbf16>
    %43 = vector.extract_strided_slice %30 {offsets = [0, 0], sizes = [16, 8], strides = [1, 1]} : vector<16x32xf32> to vector<16x8xf32>
    %44 = vector.extract_strided_slice %30 {offsets = [0, 8], sizes = [16, 8], strides = [1, 1]} : vector<16x32xf32> to vector<16x8xf32>
    %45 = vector.extract_strided_slice %30 {offsets = [0, 16], sizes = [16, 8], strides = [1, 1]} : vector<16x32xf32> to vector<16x8xf32>
    %46 = vector.extract_strided_slice %30 {offsets = [0, 24], sizes = [16, 8], strides = [1, 1]} : vector<16x32xf32> to vector<16x8xf32>
    %47 = vector.shape_cast %43 : vector<16x8xf32> to vector<1x16x8xf32>
    %48 = vector.shape_cast %44 : vector<16x8xf32> to vector<1x16x8xf32>
    %49 = vector.shape_cast %45 : vector<16x8xf32> to vector<1x16x8xf32>
    %50 = vector.shape_cast %46 : vector<16x8xf32> to vector<1x16x8xf32>
    %51 = tpu.concatenate %47, %48, %49, %50 in 0 : vector<1x16x8xf32>, vector<1x16x8xf32>, vector<1x16x8xf32>, vector<1x16x8xf32> -> vector<4x16x8xf32>
    %52 = arith.truncf %51 : vector<4x16x8xf32> to vector<4x16x8xbf16>
    %53 = vector.extract_strided_slice %32 {offsets = [0, 0], sizes = [16, 8], strides = [1, 1]} : vector<16x32xf32> to vector<16x8xf32>
    %54 = vector.extract_strided_slice %32 {offsets = [0, 8], sizes = [16, 8], strides = [1, 1]} : vector<16x32xf32> to vector<16x8xf32>
    %55 = vector.extract_strided_slice %32 {offsets = [0, 16], sizes = [16, 8], strides = [1, 1]} : vector<16x32xf32> to vector<16x8xf32>
    %56 = vector.extract_strided_slice %32 {offsets = [0, 24], sizes = [16, 8], strides = [1, 1]} : vector<16x32xf32> to vector<16x8xf32>
    %57 = vector.shape_cast %53 : vector<16x8xf32> to vector<1x16x8xf32>
    %58 = vector.shape_cast %54 : vector<16x8xf32> to vector<1x16x8xf32>
    %59 = vector.shape_cast %55 : vector<16x8xf32> to vector<1x16x8xf32>
    %60 = vector.shape_cast %56 : vector<16x8xf32> to vector<1x16x8xf32>
    %61 = tpu.concatenate %57, %58, %59, %60 in 0 : vector<1x16x8xf32>, vector<1x16x8xf32>, vector<1x16x8xf32>, vector<1x16x8xf32> -> vector<4x16x8xf32>
    %62 = arith.truncf %61 : vector<4x16x8xf32> to vector<4x16x8xbf16>
    "tpu.trace_start"() <{level = 10 : i32, message = "hqd,hkd->hqk"}> : () -> ()
    %cst_20 = arith.constant dense<0.000000e+00> : vector<4x16x16xf32>
    %63 = tpu.matmul %42, %52, %cst_20 {dimension_numbers = #tpu.dot_dimension_numbers<[2], [2], [1], [1], [0, 0, 0, 1, 1, 1], [0], [0]>} : vector<4x16x8xbf16>, vector<4x16x8xbf16>, vector<4x16x16xf32> -> vector<4x16x16xf32>
    "tpu.trace_stop"() : () -> ()
    %cst_21 = arith.constant 0.353553385 : f32
    %64 = vector.broadcast %cst_21 : f32 to vector<4x16x16xf32>
    %65 = arith.mulf %63, %64 : vector<4x16x16xf32>
    %66 = vector.shape_cast %1 : vector<16x16xf32> to vector<1x16x16xf32>
    %67 = vector.broadcast %66 : vector<1x16x16xf32> to vector<4x16x16xf32>
    %68 = arith.addf %65, %67 : vector<4x16x16xf32>
    %cst_22 = arith.constant dense<0xFF800000> : vector<4x16xf32>
    %69 = vector.multi_reduction <maximumf>, %68, %cst_22 [2] : vector<4x16x16xf32> to vector<4x16xf32>
    %70 = vector.shape_cast %69 : vector<4x16xf32> to vector<4x16x1xf32>
    %71 = vector.broadcast %70 : vector<4x16x1xf32> to vector<4x16x16xf32>
    %72 = arith.subf %68, %71 : vector<4x16x16xf32>
    %73 = math.exp %72 : vector<4x16x16xf32>
    %cst_23 = arith.constant dense<0.000000e+00> : vector<4x16xf32>
    %74 = vector.multi_reduction <add>, %73, %cst_23 [2] : vector<4x16x16xf32> to vector<4x16xf32>
    %75 = vector.shape_cast %74 : vector<4x16xf32> to vector<4x16x1xf32>
    %76 = tpu.reciprocal %75 {approx = true} : vector<4x16x1xf32> -> vector<4x16x1xf32>
    %77 = vector.broadcast %76 : vector<4x16x1xf32> to vector<4x16x16xf32>
    %78 = arith.mulf %73, %77 : vector<4x16x16xf32>
    %79 = arith.truncf %78 : vector<4x16x16xf32> to vector<4x16x16xbf16>
    "tpu.trace_start"() <{level = 10 : i32, message = "hqk,hkd->hqd"}> : () -> ()
    %cst_24 = arith.constant dense<0.000000e+00> : vector<4x16x8xf32>
    %80 = tpu.matmul %79, %62, %cst_24 {dimension_numbers = #tpu.dot_dimension_numbers<[2], [1], [1], [2], [0, 0, 0, 1, 1, 2], [0], [0]>} : vector<4x16x16xbf16>, vector<4x16x8xbf16>, vector<4x16x8xf32> -> vector<4x16x8xf32>
    "tpu.trace_stop"() : () -> ()
    %81 = vector.extract_strided_slice %80 {offsets = [0, 0, 0], sizes = [1, 16, 8], strides = [1, 1, 1]} : vector<4x16x8xf32> to vector<1x16x8xf32>
    %82 = vector.shape_cast %81 : vector<1x16x8xf32> to vector<16x8xf32>
    %83 = vector.extract_strided_slice %80 {offsets = [1, 0, 0], sizes = [1, 16, 8], strides = [1, 1, 1]} : vector<4x16x8xf32> to vector<1x16x8xf32>
    %84 = vector.shape_cast %83 : vector<1x16x8xf32> to vector<16x8xf32>
    %85 = vector.extract_strided_slice %80 {offsets = [2, 0, 0], sizes = [1, 16, 8], strides = [1, 1, 1]} : vector<4x16x8xf32> to vector<1x16x8xf32>
    %86 = vector.shape_cast %85 : vector<1x16x8xf32> to vector<16x8xf32>
    %87 = vector.extract_strided_slice %80 {offsets = [3, 0, 0], sizes = [1, 16, 8], strides = [1, 1, 1]} : vector<4x16x8xf32> to vector<1x16x8xf32>
    %88 = vector.shape_cast %87 : vector<1x16x8xf32> to vector<16x8xf32>
    %89 = tpu.concatenate %82, %84, %86, %88 in 1 : vector<16x8xf32>, vector<16x8xf32>, vector<16x8xf32>, vector<16x8xf32> -> vector<16x32xf32>
    %90 = arith.truncf %89 : vector<16x32xf32> to vector<16x32xbf16>
    %c0_25 = arith.constant 0 : index
    %c0_26 = arith.constant 0 : index
    %91 = vector.load %arg7[%c0_25, %c0_26] : memref<32x32xbf16, #tpu.memory_space<vmem>>, vector<32x32xbf16>
    %cst_27 = arith.constant dense<0.000000e+00> : vector<16x32xf32>
    %92 = tpu.matmul %90, %91, %cst_27 {dimension_numbers = #tpu.dot_dimension_numbers<[1], [0], [0], [1], [0, 0, 1, 1], [], []>} : vector<16x32xbf16>, vector<32x32xbf16>, vector<16x32xf32> -> vector<16x32xf32>
    %c0_28 = arith.constant 0 : index
    %c0_29 = arith.constant 0 : index
    %93 = vector.load %arg8[%c0_28, %c0_29] : memref<1x32xf32, #tpu.memory_space<vmem>>, vector<1x32xf32>
    %94 = vector.broadcast %93 : vector<1x32xf32> to vector<16x32xf32>
    %95 = arith.addf %92, %94 : vector<16x32xf32>
    %96 = arith.addf %0, %95 : vector<16x32xf32>
    %c0_30 = arith.constant 0 : index
    %c0_31 = arith.constant 0 : index
    %97 = vector.load %arg9[%c0_30, %c0_31] : memref<1x32xf32, #tpu.memory_space<vmem>>, vector<1x32xf32>
    %c0_32 = arith.constant 0 : index
    %c0_33 = arith.constant 0 : index
    %98 = vector.load %arg10[%c0_32, %c0_33] : memref<1x32xf32, #tpu.memory_space<vmem>>, vector<1x32xf32>
    %cst_34 = arith.constant dense<0.000000e+00> : vector<16xf32>
    %99 = vector.multi_reduction <add>, %96, %cst_34 [1] : vector<16x32xf32> to vector<16xf32>
    %100 = vector.shape_cast %99 : vector<16xf32> to vector<16x1xf32>
    %cst_35 = arith.constant 3.200000e+01 : f32
    %101 = vector.broadcast %cst_35 : f32 to vector<16x1xf32>
    %102 = arith.divf %100, %101 : vector<16x1xf32>
    %103 = vector.broadcast %102 : vector<16x1xf32> to vector<16x32xf32>
    %104 = arith.subf %96, %103 : vector<16x32xf32>
    %105 = arith.mulf %104, %104 : vector<16x32xf32>
    %cst_36 = arith.constant dense<0.000000e+00> : vector<16xf32>
    %106 = vector.multi_reduction <add>, %105, %cst_36 [1] : vector<16x32xf32> to vector<16xf32>
    %107 = vector.shape_cast %106 : vector<16xf32> to vector<16x1xf32>
    %cst_37 = arith.constant 3.200000e+01 : f32
    %108 = vector.broadcast %cst_37 : f32 to vector<16x1xf32>
    %109 = arith.divf %107, %108 : vector<16x1xf32>
    %110 = vector.broadcast %102 : vector<16x1xf32> to vector<16x32xf32>
    %111 = arith.subf %96, %110 : vector<16x32xf32>
    %cst_38 = arith.constant 9.99999974E-6 : f32
    %112 = vector.broadcast %cst_38 : f32 to vector<16x1xf32>
    %113 = arith.addf %109, %112 : vector<16x1xf32>
    %114 = math.rsqrt %113 : vector<16x1xf32>
    %115 = vector.broadcast %114 : vector<16x1xf32> to vector<16x32xf32>
    %116 = arith.mulf %111, %115 : vector<16x32xf32>
    %117 = vector.broadcast %97 : vector<1x32xf32> to vector<16x32xf32>
    %118 = arith.mulf %116, %117 : vector<16x32xf32>
    %119 = vector.broadcast %98 : vector<1x32xf32> to vector<16x32xf32>
    %120 = arith.addf %118, %119 : vector<16x32xf32>
    %121 = arith.truncf %120 : vector<16x32xf32> to vector<16x32xbf16>
    %c0_39 = arith.constant 0 : index
    %c0_40 = arith.constant 0 : index
    %122 = vector.load %arg11[%c0_39, %c0_40] : memref<32x128xbf16, #tpu.memory_space<vmem>>, vector<32x128xbf16>
    %cst_41 = arith.constant dense<0.000000e+00> : vector<16x128xf32>
    %123 = tpu.matmul %121, %122, %cst_41 {dimension_numbers = #tpu.dot_dimension_numbers<[1], [0], [0], [1], [0, 0, 1, 1], [], []>} : vector<16x32xbf16>, vector<32x128xbf16>, vector<16x128xf32> -> vector<16x128xf32>
    %c0_42 = arith.constant 0 : index
    %c0_43 = arith.constant 0 : index
    %124 = vector.load %arg12[%c0_42, %c0_43] : memref<1x128xf32, #tpu.memory_space<vmem>>, vector<1x128xf32>
    %125 = vector.broadcast %124 : vector<1x128xf32> to vector<16x128xf32>
    %126 = arith.addf %123, %125 : vector<16x128xf32>
    %cst_44 = arith.constant 0.000000e+00 : f32
    %127 = vector.broadcast %cst_44 : f32 to vector<16x128xf32>
    %128 = arith.maximumf %126, %127 : vector<16x128xf32>
    %129 = arith.truncf %128 : vector<16x128xf32> to vector<16x128xbf16>
    %c0_45 = arith.constant 0 : index
    %c0_46 = arith.constant 0 : index
    %130 = vector.load %arg13[%c0_45, %c0_46] : memref<128x32xbf16, #tpu.memory_space<vmem>>, vector<128x32xbf16>
    %cst_47 = arith.constant dense<0.000000e+00> : vector<16x32xf32>
    %131 = tpu.matmul %129, %130, %cst_47 {dimension_numbers = #tpu.dot_dimension_numbers<[1], [0], [0], [1], [0, 0, 1, 1], [], []>} : vector<16x128xbf16>, vector<128x32xbf16>, vector<16x32xf32> -> vector<16x32xf32>
    %c0_48 = arith.constant 0 : index
    %c0_49 = arith.constant 0 : index
    %132 = vector.load %arg14[%c0_48, %c0_49] : memref<1x32xf32, #tpu.memory_space<vmem>>, vector<1x32xf32>
    %133 = vector.broadcast %132 : vector<1x32xf32> to vector<16x32xf32>
    %134 = arith.addf %131, %133 : vector<16x32xf32>
    %135 = arith.addf %96, %134 : vector<16x32xf32>
    %c0_50 = arith.constant 0 : index
    %c0_51 = arith.constant 0 : index
    %136 = vector.load %arg15[%c0_50, %c0_51] : memref<1x32xf32, #tpu.memory_space<vmem>>, vector<1x32xf32>
    %c0_52 = arith.constant 0 : index
    %c0_53 = arith.constant 0 : index
    %137 = vector.load %arg16[%c0_52, %c0_53] : memref<1x32xf32, #tpu.memory_space<vmem>>, vector<1x32xf32>
    %cst_54 = arith.constant dense<0.000000e+00> : vector<16xf32>
    %138 = vector.multi_reduction <add>, %135, %cst_54 [1] : vector<16x32xf32> to vector<16xf32>
    %139 = vector.shape_cast %138 : vector<16xf32> to vector<16x1xf32>
    %cst_55 = arith.constant 3.200000e+01 : f32
    %140 = vector.broadcast %cst_55 : f32 to vector<16x1xf32>
    %141 = arith.divf %139, %140 : vector<16x1xf32>
    %142 = vector.broadcast %141 : vector<16x1xf32> to vector<16x32xf32>
    %143 = arith.subf %135, %142 : vector<16x32xf32>
    %144 = arith.mulf %143, %143 : vector<16x32xf32>
    %cst_56 = arith.constant dense<0.000000e+00> : vector<16xf32>
    %145 = vector.multi_reduction <add>, %144, %cst_56 [1] : vector<16x32xf32> to vector<16xf32>
    %146 = vector.shape_cast %145 : vector<16xf32> to vector<16x1xf32>
    %cst_57 = arith.constant 3.200000e+01 : f32
    %147 = vector.broadcast %cst_57 : f32 to vector<16x1xf32>
    %148 = arith.divf %146, %147 : vector<16x1xf32>
    %149 = vector.broadcast %141 : vector<16x1xf32> to vector<16x32xf32>
    %150 = arith.subf %135, %149 : vector<16x32xf32>
    %cst_58 = arith.constant 9.99999974E-6 : f32
    %151 = vector.broadcast %cst_58 : f32 to vector<16x1xf32>
    %152 = arith.addf %148, %151 : vector<16x1xf32>
    %153 = math.rsqrt %152 : vector<16x1xf32>
    %154 = vector.broadcast %153 : vector<16x1xf32> to vector<16x32xf32>
    %155 = arith.mulf %150, %154 : vector<16x32xf32>
    %156 = vector.broadcast %136 : vector<1x32xf32> to vector<16x32xf32>
    %157 = arith.mulf %155, %156 : vector<16x32xf32>
    %158 = vector.broadcast %137 : vector<1x32xf32> to vector<16x32xf32>
    %159 = arith.addf %157, %158 : vector<16x32xf32>
    %160 = arith.truncf %159 : vector<16x32xf32> to vector<16x32xbf16>
    %c0_59 = arith.constant 0 : index
    %c0_60 = arith.constant 0 : index
    %161 = vector.load %arg17[%c0_59, %c0_60] : memref<32x32xbf16, #tpu.memory_space<vmem>>, vector<32x32xbf16>
    %cst_61 = arith.constant dense<0.000000e+00> : vector<16x32xf32>
    %162 = tpu.matmul %160, %161, %cst_61 {dimension_numbers = #tpu.dot_dimension_numbers<[1], [0], [0], [1], [0, 0, 1, 1], [], []>} : vector<16x32xbf16>, vector<32x32xbf16>, vector<16x32xf32> -> vector<16x32xf32>
    %c0_62 = arith.constant 0 : index
    %c0_63 = arith.constant 0 : index
    %163 = vector.load %arg18[%c0_62, %c0_63] : memref<32x32xbf16, #tpu.memory_space<vmem>>, vector<32x32xbf16>
    %cst_64 = arith.constant dense<0.000000e+00> : vector<16x32xf32>
    %164 = tpu.matmul %160, %163, %cst_64 {dimension_numbers = #tpu.dot_dimension_numbers<[1], [0], [0], [1], [0, 0, 1, 1], [], []>} : vector<16x32xbf16>, vector<32x32xbf16>, vector<16x32xf32> -> vector<16x32xf32>
    %c0_65 = arith.constant 0 : index
    %c0_66 = arith.constant 0 : index
    %165 = vector.load %arg19[%c0_65, %c0_66] : memref<32x32xbf16, #tpu.memory_space<vmem>>, vector<32x32xbf16>
    %cst_67 = arith.constant dense<0.000000e+00> : vector<16x32xf32>
    %166 = tpu.matmul %160, %165, %cst_67 {dimension_numbers = #tpu.dot_dimension_numbers<[1], [0], [0], [1], [0, 0, 1, 1], [], []>} : vector<16x32xbf16>, vector<32x32xbf16>, vector<16x32xf32> -> vector<16x32xf32>
    %167 = vector.extract_strided_slice %162 {offsets = [0, 0], sizes = [16, 8], strides = [1, 1]} : vector<16x32xf32> to vector<16x8xf32>
    %168 = vector.extract_strided_slice %162 {offsets = [0, 8], sizes = [16, 8], strides = [1, 1]} : vector<16x32xf32> to vector<16x8xf32>
    %169 = vector.extract_strided_slice %162 {offsets = [0, 16], sizes = [16, 8], strides = [1, 1]} : vector<16x32xf32> to vector<16x8xf32>
    %170 = vector.extract_strided_slice %162 {offsets = [0, 24], sizes = [16, 8], strides = [1, 1]} : vector<16x32xf32> to vector<16x8xf32>
    %171 = vector.shape_cast %167 : vector<16x8xf32> to vector<1x16x8xf32>
    %172 = vector.shape_cast %168 : vector<16x8xf32> to vector<1x16x8xf32>
    %173 = vector.shape_cast %169 : vector<16x8xf32> to vector<1x16x8xf32>
    %174 = vector.shape_cast %170 : vector<16x8xf32> to vector<1x16x8xf32>
    %175 = tpu.concatenate %171, %172, %173, %174 in 0 : vector<1x16x8xf32>, vector<1x16x8xf32>, vector<1x16x8xf32>, vector<1x16x8xf32> -> vector<4x16x8xf32>
    %176 = arith.truncf %175 : vector<4x16x8xf32> to vector<4x16x8xbf16>
    %177 = vector.extract_strided_slice %164 {offsets = [0, 0], sizes = [16, 8], strides = [1, 1]} : vector<16x32xf32> to vector<16x8xf32>
    %178 = vector.extract_strided_slice %164 {offsets = [0, 8], sizes = [16, 8], strides = [1, 1]} : vector<16x32xf32> to vector<16x8xf32>
    %179 = vector.extract_strided_slice %164 {offsets = [0, 16], sizes = [16, 8], strides = [1, 1]} : vector<16x32xf32> to vector<16x8xf32>
    %180 = vector.extract_strided_slice %164 {offsets = [0, 24], sizes = [16, 8], strides = [1, 1]} : vector<16x32xf32> to vector<16x8xf32>
    %181 = vector.shape_cast %177 : vector<16x8xf32> to vector<1x16x8xf32>
    %182 = vector.shape_cast %178 : vector<16x8xf32> to vector<1x16x8xf32>
    %183 = vector.shape_cast %179 : vector<16x8xf32> to vector<1x16x8xf32>
    %184 = vector.shape_cast %180 : vector<16x8xf32> to vector<1x16x8xf32>
    %185 = tpu.concatenate %181, %182, %183, %184 in 0 : vector<1x16x8xf32>, vector<1x16x8xf32>, vector<1x16x8xf32>, vector<1x16x8xf32> -> vector<4x16x8xf32>
    %186 = arith.truncf %185 : vector<4x16x8xf32> to vector<4x16x8xbf16>
    %187 = vector.extract_strided_slice %166 {offsets = [0, 0], sizes = [16, 8], strides = [1, 1]} : vector<16x32xf32> to vector<16x8xf32>
    %188 = vector.extract_strided_slice %166 {offsets = [0, 8], sizes = [16, 8], strides = [1, 1]} : vector<16x32xf32> to vector<16x8xf32>
    %189 = vector.extract_strided_slice %166 {offsets = [0, 16], sizes = [16, 8], strides = [1, 1]} : vector<16x32xf32> to vector<16x8xf32>
    %190 = vector.extract_strided_slice %166 {offsets = [0, 24], sizes = [16, 8], strides = [1, 1]} : vector<16x32xf32> to vector<16x8xf32>
    %191 = vector.shape_cast %187 : vector<16x8xf32> to vector<1x16x8xf32>
    %192 = vector.shape_cast %188 : vector<16x8xf32> to vector<1x16x8xf32>
    %193 = vector.shape_cast %189 : vector<16x8xf32> to vector<1x16x8xf32>
    %194 = vector.shape_cast %190 : vector<16x8xf32> to vector<1x16x8xf32>
    %195 = tpu.concatenate %191, %192, %193, %194 in 0 : vector<1x16x8xf32>, vector<1x16x8xf32>, vector<1x16x8xf32>, vector<1x16x8xf32> -> vector<4x16x8xf32>
    %196 = arith.truncf %195 : vector<4x16x8xf32> to vector<4x16x8xbf16>
    "tpu.trace_start"() <{level = 10 : i32, message = "hqd,hkd->hqk"}> : () -> ()
    %cst_68 = arith.constant dense<0.000000e+00> : vector<4x16x16xf32>
    %197 = tpu.matmul %176, %186, %cst_68 {dimension_numbers = #tpu.dot_dimension_numbers<[2], [2], [1], [1], [0, 0, 0, 1, 1, 1], [0], [0]>} : vector<4x16x8xbf16>, vector<4x16x8xbf16>, vector<4x16x16xf32> -> vector<4x16x16xf32>
    "tpu.trace_stop"() : () -> ()
    %cst_69 = arith.constant 0.353553385 : f32
    %198 = vector.broadcast %cst_69 : f32 to vector<4x16x16xf32>
    %199 = arith.mulf %197, %198 : vector<4x16x16xf32>
    %200 = vector.shape_cast %1 : vector<16x16xf32> to vector<1x16x16xf32>
    %201 = vector.broadcast %200 : vector<1x16x16xf32> to vector<4x16x16xf32>
    %202 = arith.addf %199, %201 : vector<4x16x16xf32>
    %cst_70 = arith.constant dense<0xFF800000> : vector<4x16xf32>
    %203 = vector.multi_reduction <maximumf>, %202, %cst_70 [2] : vector<4x16x16xf32> to vector<4x16xf32>
    %204 = vector.shape_cast %203 : vector<4x16xf32> to vector<4x16x1xf32>
    %205 = vector.broadcast %204 : vector<4x16x1xf32> to vector<4x16x16xf32>
    %206 = arith.subf %202, %205 : vector<4x16x16xf32>
    %207 = math.exp %206 : vector<4x16x16xf32>
    %cst_71 = arith.constant dense<0.000000e+00> : vector<4x16xf32>
    %208 = vector.multi_reduction <add>, %207, %cst_71 [2] : vector<4x16x16xf32> to vector<4x16xf32>
    %209 = vector.shape_cast %208 : vector<4x16xf32> to vector<4x16x1xf32>
    %210 = tpu.reciprocal %209 {approx = true} : vector<4x16x1xf32> -> vector<4x16x1xf32>
    %211 = vector.broadcast %210 : vector<4x16x1xf32> to vector<4x16x16xf32>
    %212 = arith.mulf %207, %211 : vector<4x16x16xf32>
    %213 = arith.truncf %212 : vector<4x16x16xf32> to vector<4x16x16xbf16>
    "tpu.trace_start"() <{level = 10 : i32, message = "hqk,hkd->hqd"}> : () -> ()
    %cst_72 = arith.constant dense<0.000000e+00> : vector<4x16x8xf32>
    %214 = tpu.matmul %213, %196, %cst_72 {dimension_numbers = #tpu.dot_dimension_numbers<[2], [1], [1], [2], [0, 0, 0, 1, 1, 2], [0], [0]>} : vector<4x16x16xbf16>, vector<4x16x8xbf16>, vector<4x16x8xf32> -> vector<4x16x8xf32>
    "tpu.trace_stop"() : () -> ()
    %215 = vector.extract_strided_slice %214 {offsets = [0, 0, 0], sizes = [1, 16, 8], strides = [1, 1, 1]} : vector<4x16x8xf32> to vector<1x16x8xf32>
    %216 = vector.shape_cast %215 : vector<1x16x8xf32> to vector<16x8xf32>
    %217 = vector.extract_strided_slice %214 {offsets = [1, 0, 0], sizes = [1, 16, 8], strides = [1, 1, 1]} : vector<4x16x8xf32> to vector<1x16x8xf32>
    %218 = vector.shape_cast %217 : vector<1x16x8xf32> to vector<16x8xf32>
    %219 = vector.extract_strided_slice %214 {offsets = [2, 0, 0], sizes = [1, 16, 8], strides = [1, 1, 1]} : vector<4x16x8xf32> to vector<1x16x8xf32>
    %220 = vector.shape_cast %219 : vector<1x16x8xf32> to vector<16x8xf32>
    %221 = vector.extract_strided_slice %214 {offsets = [3, 0, 0], sizes = [1, 16, 8], strides = [1, 1, 1]} : vector<4x16x8xf32> to vector<1x16x8xf32>
    %222 = vector.shape_cast %221 : vector<1x16x8xf32> to vector<16x8xf32>
    %223 = tpu.concatenate %216, %218, %220, %222 in 1 : vector<16x8xf32>, vector<16x8xf32>, vector<16x8xf32>, vector<16x8xf32> -> vector<16x32xf32>
    %224 = arith.truncf %223 : vector<16x32xf32> to vector<16x32xbf16>
    %c0_73 = arith.constant 0 : index
    %c0_74 = arith.constant 0 : index
    %225 = vector.load %arg20[%c0_73, %c0_74] : memref<32x32xbf16, #tpu.memory_space<vmem>>, vector<32x32xbf16>
    %cst_75 = arith.constant dense<0.000000e+00> : vector<16x32xf32>
    %226 = tpu.matmul %224, %225, %cst_75 {dimension_numbers = #tpu.dot_dimension_numbers<[1], [0], [0], [1], [0, 0, 1, 1], [], []>} : vector<16x32xbf16>, vector<32x32xbf16>, vector<16x32xf32> -> vector<16x32xf32>
    %c0_76 = arith.constant 0 : index
    %c0_77 = arith.constant 0 : index
    %227 = vector.load %arg21[%c0_76, %c0_77] : memref<1x32xf32, #tpu.memory_space<vmem>>, vector<1x32xf32>
    %228 = vector.broadcast %227 : vector<1x32xf32> to vector<16x32xf32>
    %229 = arith.addf %226, %228 : vector<16x32xf32>
    %230 = arith.addf %135, %229 : vector<16x32xf32>
    %c0_78 = arith.constant 0 : index
    %c0_79 = arith.constant 0 : index
    %231 = vector.load %arg22[%c0_78, %c0_79] : memref<1x32xf32, #tpu.memory_space<vmem>>, vector<1x32xf32>
    %c0_80 = arith.constant 0 : index
    %c0_81 = arith.constant 0 : index
    %232 = vector.load %arg23[%c0_80, %c0_81] : memref<1x32xf32, #tpu.memory_space<vmem>>, vector<1x32xf32>
    %cst_82 = arith.constant dense<0.000000e+00> : vector<16xf32>
    %233 = vector.multi_reduction <add>, %230, %cst_82 [1] : vector<16x32xf32> to vector<16xf32>
    %234 = vector.shape_cast %233 : vector<16xf32> to vector<16x1xf32>
    %cst_83 = arith.constant 3.200000e+01 : f32
    %235 = vector.broadcast %cst_83 : f32 to vector<16x1xf32>
    %236 = arith.divf %234, %235 : vector<16x1xf32>
    %237 = vector.broadcast %236 : vector<16x1xf32> to vector<16x32xf32>
    %238 = arith.subf %230, %237 : vector<16x32xf32>
    %239 = arith.mulf %238, %238 : vector<16x32xf32>
    %cst_84 = arith.constant dense<0.000000e+00> : vector<16xf32>
    %240 = vector.multi_reduction <add>, %239, %cst_84 [1] : vector<16x32xf32> to vector<16xf32>
    %241 = vector.shape_cast %240 : vector<16xf32> to vector<16x1xf32>
    %cst_85 = arith.constant 3.200000e+01 : f32
    %242 = vector.broadcast %cst_85 : f32 to vector<16x1xf32>
    %243 = arith.divf %241, %242 : vector<16x1xf32>
    %244 = vector.broadcast %236 : vector<16x1xf32> to vector<16x32xf32>
    %245 = arith.subf %230, %244 : vector<16x32xf32>
    %cst_86 = arith.constant 9.99999974E-6 : f32
    %246 = vector.broadcast %cst_86 : f32 to vector<16x1xf32>
    %247 = arith.addf %243, %246 : vector<16x1xf32>
    %248 = math.rsqrt %247 : vector<16x1xf32>
    %249 = vector.broadcast %248 : vector<16x1xf32> to vector<16x32xf32>
    %250 = arith.mulf %245, %249 : vector<16x32xf32>
    %251 = vector.broadcast %231 : vector<1x32xf32> to vector<16x32xf32>
    %252 = arith.mulf %250, %251 : vector<16x32xf32>
    %253 = vector.broadcast %232 : vector<1x32xf32> to vector<16x32xf32>
    %254 = arith.addf %252, %253 : vector<16x32xf32>
    %255 = arith.truncf %254 : vector<16x32xf32> to vector<16x32xbf16>
    %c0_87 = arith.constant 0 : index
    %c0_88 = arith.constant 0 : index
    %256 = vector.load %arg24[%c0_87, %c0_88] : memref<32x128xbf16, #tpu.memory_space<vmem>>, vector<32x128xbf16>
    %cst_89 = arith.constant dense<0.000000e+00> : vector<16x128xf32>
    %257 = tpu.matmul %255, %256, %cst_89 {dimension_numbers = #tpu.dot_dimension_numbers<[1], [0], [0], [1], [0, 0, 1, 1], [], []>} : vector<16x32xbf16>, vector<32x128xbf16>, vector<16x128xf32> -> vector<16x128xf32>
    %c0_90 = arith.constant 0 : index
    %c0_91 = arith.constant 0 : index
    %258 = vector.load %arg25[%c0_90, %c0_91] : memref<1x128xf32, #tpu.memory_space<vmem>>, vector<1x128xf32>
    %259 = vector.broadcast %258 : vector<1x128xf32> to vector<16x128xf32>
    %260 = arith.addf %257, %259 : vector<16x128xf32>
    %cst_92 = arith.constant 0.000000e+00 : f32
    %261 = vector.broadcast %cst_92 : f32 to vector<16x128xf32>
    %262 = arith.maximumf %260, %261 : vector<16x128xf32>
    %263 = arith.truncf %262 : vector<16x128xf32> to vector<16x128xbf16>
    %c0_93 = arith.constant 0 : index
    %c0_94 = arith.constant 0 : index
    %264 = vector.load %arg26[%c0_93, %c0_94] : memref<128x32xbf16, #tpu.memory_space<vmem>>, vector<128x32xbf16>
    %cst_95 = arith.constant dense<0.000000e+00> : vector<16x32xf32>
    %265 = tpu.matmul %263, %264, %cst_95 {dimension_numbers = #tpu.dot_dimension_numbers<[1], [0], [0], [1], [0, 0, 1, 1], [], []>} : vector<16x128xbf16>, vector<128x32xbf16>, vector<16x32xf32> -> vector<16x32xf32>
    %c0_96 = arith.constant 0 : index
    %c0_97 = arith.constant 0 : index
    %266 = vector.load %arg27[%c0_96, %c0_97] : memref<1x32xf32, #tpu.memory_space<vmem>>, vector<1x32xf32>
    %267 = vector.broadcast %266 : vector<1x32xf32> to vector<16x32xf32>
    %268 = arith.addf %265, %267 : vector<16x32xf32>
    %269 = arith.addf %230, %268 : vector<16x32xf32>
    %c0_98 = arith.constant 0 : index
    %c0_99 = arith.constant 0 : index
    %270 = vector.load %arg28[%c0_98, %c0_99] : memref<1x32xf32, #tpu.memory_space<vmem>>, vector<1x32xf32>
    %c0_100 = arith.constant 0 : index
    %c0_101 = arith.constant 0 : index
    %271 = vector.load %arg29[%c0_100, %c0_101] : memref<1x32xf32, #tpu.memory_space<vmem>>, vector<1x32xf32>
    %cst_102 = arith.constant dense<0.000000e+00> : vector<16xf32>
    %272 = vector.multi_reduction <add>, %269, %cst_102 [1] : vector<16x32xf32> to vector<16xf32>
    %273 = vector.shape_cast %272 : vector<16xf32> to vector<16x1xf32>
    %cst_103 = arith.constant 3.200000e+01 : f32
    %274 = vector.broadcast %cst_103 : f32 to vector<16x1xf32>
    %275 = arith.divf %273, %274 : vector<16x1xf32>
    %276 = vector.broadcast %275 : vector<16x1xf32> to vector<16x32xf32>
    %277 = arith.subf %269, %276 : vector<16x32xf32>
    %278 = arith.mulf %277, %277 : vector<16x32xf32>
    %cst_104 = arith.constant dense<0.000000e+00> : vector<16xf32>
    %279 = vector.multi_reduction <add>, %278, %cst_104 [1] : vector<16x32xf32> to vector<16xf32>
    %280 = vector.shape_cast %279 : vector<16xf32> to vector<16x1xf32>
    %cst_105 = arith.constant 3.200000e+01 : f32
    %281 = vector.broadcast %cst_105 : f32 to vector<16x1xf32>
    %282 = arith.divf %280, %281 : vector<16x1xf32>
    %283 = vector.broadcast %275 : vector<16x1xf32> to vector<16x32xf32>
    %284 = arith.subf %269, %283 : vector<16x32xf32>
    %cst_106 = arith.constant 9.99999974E-6 : f32
    %285 = vector.broadcast %cst_106 : f32 to vector<16x1xf32>
    %286 = arith.addf %282, %285 : vector<16x1xf32>
    %287 = math.rsqrt %286 : vector<16x1xf32>
    %288 = vector.broadcast %287 : vector<16x1xf32> to vector<16x32xf32>
    %289 = arith.mulf %284, %288 : vector<16x32xf32>
    %290 = vector.broadcast %270 : vector<1x32xf32> to vector<16x32xf32>
    %291 = arith.mulf %289, %290 : vector<16x32xf32>
    %292 = vector.broadcast %271 : vector<1x32xf32> to vector<16x32xf32>
    %293 = arith.addf %291, %292 : vector<16x32xf32>
    %294 = arith.truncf %293 : vector<16x32xf32> to vector<16x32xbf16>
    %c0_107 = arith.constant 0 : index
    %c0_108 = arith.constant 0 : index
    %295 = vector.load %arg30[%c0_107, %c0_108] : memref<32x64xbf16, #tpu.memory_space<vmem>>, vector<32x64xbf16>
    %cst_109 = arith.constant dense<0.000000e+00> : vector<16x64xf32>
    %296 = tpu.matmul %294, %295, %cst_109 {dimension_numbers = #tpu.dot_dimension_numbers<[1], [0], [0], [1], [0, 0, 1, 1], [], []>} : vector<16x32xbf16>, vector<32x64xbf16>, vector<16x64xf32> -> vector<16x64xf32>
    %c0_110 = arith.constant 0 : index
    %c0_111 = arith.constant 0 : index
    %297 = vector.load %arg31[%c0_110, %c0_111] : memref<1x64xf32, #tpu.memory_space<vmem>>, vector<1x64xf32>
    %298 = vector.broadcast %297 : vector<1x64xf32> to vector<16x64xf32>
    %299 = arith.addf %296, %298 : vector<16x64xf32>
    %c0_112 = arith.constant 0 : index
    %c0_113 = arith.constant 0 : index
    %300 = vector.load %arg32[%c0_112, %c0_113] : memref<16x64xf32, #tpu.memory_space<vmem>>, vector<16x64xf32>
    tpu.vector_store %arg32[%c0_112, %c0_113], %299 {strides = array<i32>} : memref<16x64xf32, #tpu.memory_space<vmem>>, vector<16x64xf32>,
    return
  }
}

</mosaic_0001>

<bundles_post_ra>
// kernel: _forward_logits.1
= control target key start
LH: loop header
LB: loop body
LE: loop exit
PB: predicated region body
PF: predicated region fallthrough
CT: control target
= control target key end

     0   :  { %s3189_s6 = smov 1   ;;  %s3190_s10 = smov 2   ;;  %s3790_s0 = inlined_call_operand.smem [shape: u32[33], index: -1, kind: input, shape index: {}] }
   0x1   :  { %s3239_s5 = sld [smem:[%s3790_s0]]   ;;  %s3191_s14 = smov 3  }
   0x2   :  { %s3244_s9 = sld [smem:[%s3790_s0 + %s3189_s6]]   ;;  %s3192_s18 = smov 4  }
   0x3   :  { %s3249_s13 = sld [smem:[%s3790_s0 + %s3190_s10]]   ;;  %s3193_s22 = smov 5  }
   0x4   :  { %s3254_s17 = sld [smem:[%s3790_s0 + %s3191_s14]]   ;;  %s3194_s26 = smov 6  }
   0x5   :  { %s3259_s21 = sld [smem:[%s3790_s0 + %s3192_s18]]   ;;  %s3195_s30 = smov 7  }
   0x6   :  { %s3264_s25 = sld [smem:[%s3790_s0 + %s3193_s22]]   ;;  %s3196_s4 = smov 8  }
   0x7   :  { %s3269_s29 = sld [smem:[%s3790_s0 + %s3194_s26]]   ;;  %s3197_s10 = smov 9  }
   0x8   :  { %s3274_s3 = sld [smem:[%s3790_s0 + %s3195_s30]]   ;;  %s3198_s15 = smov 10  }
   0x9   :  { %s3279_s8 = sld [smem:[%s3790_s0 + %s3196_s4]]   ;;  %s3199_s20 = smov 11  }
   0xa   :  { %s3284_s14 = sld [smem:[%s3790_s0 + %s3197_s10]]   ;;  %s3200_s26 = smov 12  }
   0xb   :  { %s3289_s19 = sld [smem:[%s3790_s0 + %s3198_s15]]   ;;  %s3201_s1 = smov 13  }
   0xc   :  { %s3294_s24 = sld [smem:[%s3790_s0 + %s3199_s20]]   ;;  %s3202_s7 = smov 14  }
   0xd   :  { %s3299_s30 = sld [smem:[%s3790_s0 + %s3200_s26]]   ;;  %s3203_s15 = smov 15  }
   0xe   :  { %s3304_s6 = sld [smem:[%s3790_s0 + %s3201_s1]]   ;;  %s3204_s22 = smov 16  }
   0xf   :  { %s3309_s12 = sld [smem:[%s3790_s0 + %s3202_s7]]   ;;  %s3205_s28 = smov 17  }
  0x10   :  { %s3314_s20 = sld [smem:[%s3790_s0 + %s3203_s15]]   ;;  %s3206_s7 = smov 18  }
  0x11   :  { %s3319_s27 = sld [smem:[%s3790_s0 + %s3204_s22]]   ;;  %s3207_s15 = smov 19  }
  0x12   :  { %s3324_s4 = sld [smem:[%s3790_s0 + %s3205_s28]]   ;;  %s3208_s22 = smov 20  }
  0x13   :  { %s3209_s28 = smov 21  }
  0x15   :  { %3797 = sst [smem:[#allocation5_spill]] %s3309_s12 }
  0x16   :  { %3798 = sst [smem:[#allocation6_spill]] %s3314_s20 }
  0x17   :  { %3799 = sst [smem:[#allocation7_spill]] %s3319_s27 }
  0x18   :  { %3800 = sst [smem:[#allocation8_spill]] %s3324_s4 }
  0x19   :  { %s3329_s12 = sld [smem:[%s3790_s0 + %s3206_s7]]   ;;  %s3210_s7 = smov 22  }
  0x1a   :  { %s3334_s20 = sld [smem:[%s3790_s0 + %s3207_s15]]   ;;  %s3211_s15 = smov 23  }
  0x1b   :  { %s3339_s27 = sld [smem:[%s3790_s0 + %s3208_s22]]   ;;  %s3212_s22 = smov 24  }
  0x1c   :  { %s3344_s4 = sld [smem:[%s3790_s0 + %s3209_s28]]   ;;  %s3213_s28 = smov 25  }
  0x1f   :  { %3801 = sst [smem:[#allocation9_spill]] %s3329_s12 }
  0x20   :  { %3802 = sst [smem:[#allocation10_spill]] %s3334_s20 }
  0x21   :  { %3803 = sst [smem:[#allocation11_spill]] %s3339_s27 }
  0x22   :  { %3804 = sst [smem:[#allocation12_spill]] %s3344_s4 }
  0x23   :  { %s3349_s12 = sld [smem:[%s3790_s0 + %s3210_s7]]   ;;  %s3214_s7 = smov 26  }
  0x24   :  { %s3354_s20 = sld [smem:[%s3790_s0 + %s3211_s15]]   ;;  %s3215_s15 = smov 27  }
  0x25   :  { %s3359_s27 = sld [smem:[%s3790_s0 + %s3212_s22]]   ;;  %s3216_s22 = smov 28  }
  0x26   :  { %s3364_s4 = sld [smem:[%s3790_s0 + %s3213_s28]]   ;;  %s3217_s28 = smov 29  }
  0x29   :  { %3805 = sst [smem:[#allocation13_spill]] %s3349_s12 }
  0x2a   :  { %3806 = sst [smem:[#allocation14_spill]] %s3354_s20 }
  0x2b   :  { %3807 = sst [smem:[#allocation15_spill]] %s3359_s27 }
  0x2c   :  { %3808 = sst [smem:[#allocation16_spill]] %s3364_s4 }
  0x2d   :  { %s3369_s12 = sld [smem:[%s3790_s0 + %s3214_s7]]   ;;  %s3218_s7 = smov 30  }
  0x2e   :  { %s3374_s20 = sld [smem:[%s3790_s0 + %s3215_s15]]   ;;  %s3219_s15 = smov 31  }
  0x2f   :  { %s3379_s27 = sld [smem:[%s3790_s0 + %s3216_s22]]   ;;  %s3220_s22 = smov 32  }
  0x30   :  { %s3384_s4 = sld [smem:[%s3790_s0 + %s3217_s28]]  }
  0x33   :  { %3809 = sst [smem:[#allocation17_spill]] %s3369_s12 }
  0x34   :  { %3810 = sst [smem:[#allocation18_spill]] %s3374_s20 }
  0x35   :  { %3811 = sst [smem:[#allocation19_spill]] %s3379_s27 }
  0x36   :  { %s3389_s12 = sld [smem:[%s3790_s0 + %s3218_s7]]  }
  0x37   :  { %s3394_s20 = sld [smem:[%s3790_s0 + %s3219_s15]]  }
  0x38   :  { %s3399_s27 = sld [smem:[%s3790_s0 + %s3220_s22]]  }
  0x39   :  { %v3402_v0 = vld [vmem:[%s3239_s5] sm:$0xff]  ;;  %vm142_vm0 = vcmask 261120   ;;  %v3405_v1 = vld [vmem:[%s3239_s5 + $0x8] sm:$0xff] }
  0x3a   :  { %v143_v2 = vsel %vm142_vm0, %v3402_v0, 0.0  ;;  %v146_v3 = vsel %vm142_vm0, %v3405_v1, 0.0 }
  0x3b   :  { %144 = vadd.xlane.f32.xlu0 %v143_v2 }
  0x3f   :  { %147 = vadd.xlane.f32.xlu0 %v146_v3 }
  0x40   :  { %70 = vsyncpa [#allocation3], 0  ;;  %v3043_v14 = vld [vmem:[%s3259_s21] sm:$0xff]   ;;  %v3221_v16 = vmov 0.0   ;;  %v3045_v17 = vld [vmem:[%s3259_s21 + $0x8] sm:$0xff]   ;;  %vm3222_vm1 = vmmov 0  }
  0x41   :  { %v3044_v15 = vld [vmem:[%s3269_s29] sm:$0xff]   ;;  %2657 = vmatprep.subr.bf16.mxu1 %v3221_v16  ;;  %2673 = vmatprep.subr.bf16.mxu0 %v3221_v16  ;;  %v3046_v18 = vld [vmem:[%s3269_s29 + $0x8] sm:$0xff]   ;;  %s3223_s0 = smov 120   ;;  %vm433_vm2 = vcmask 64512   ;;  %s3224_s5 = smov 112   ;;  %vm638_vm3 = vcmask 130048  }
  0x42   :  { %2658 = vmatpush3.bf16.msra.mxu1 %v3043_v14  ;;  %2674 = vmatpush3.bf16.msra.mxu0 %v3044_v15  ;;  %v2492_v27 = vld [vmem:[%s3249_s13] ss:$0 sm:$0xff]  ;;  %v3048_v37 = vld [vmem:[%s3264_s25 + $0x8] sm:$0xff]   ;;  %s3225_s13 = smov 104   ;;  %s3228_s21 = smov 24   ;;  %vm935_vm4 = vcmask 195584  }
  0x43   :  { %2659 = vmatprep.subr.bf16.mxu1 %v3221_v16  ;;  %2675 = vmatprep.subr.bf16.mxu0 %v3221_v16  ;;  %v2493_v31 = vld [vmem:[%s3254_s17] ss:$0 sm:$0xff]  ;;  %s3227_s17 = smov 16   ;;  %s3813_s29 = sld [smem:[#allocation8_spill]]  ;;  %vm2441_vm5 = vcmask 523264  }
  0x44   :  { %2661 = vmatprep.mubr.msk.bf16.mxu1 %vm3222_vm1, %v3221_v16  ;;  %2677 = vmatprep.mubr.msk.bf16.mxu0 %vm3222_vm1, %v3221_v16  ;;  %v3047_v35 = vld [vmem:[%s3264_s25] sm:$0xff]   ;;  %s3812_s25 = sld [smem:[#allocation5_spill]]  ;;  %s3821_s28 = sld [smem:[#allocation17_spill]] }
  0x45   :  { %s3822_s1 = sld [smem:[#allocation13_spill]]  ;;  %s3823_s2 = sld [smem:[#allocation14_spill]] }
  0x46   :  { %2660 = vmatpush3.bf16.msra.mxu1 %v3045_v17  ;;  %2676 = vmatpush3.bf16.msra.mxu0 %v3046_v18  ;;  %s3824_s7 = sld [smem:[#allocation16_spill]]  ;;  %s3825_s10 = sld [smem:[#allocation18_spill]] }
  0x47   :  { %2665 = vmatprep.subr.bf16.mxu1 %v3221_v16  ;;  %2687 = vmatprep.subr.bf16.mxu0 %v3221_v16  ;;  %s3826_s11 = sld [smem:[#allocation19_spill]] }
  0xc8   :  { %v145_v4 = vpop.xlane.xlu0 %144 }
  0xc9   :  { %v150_v5 = vmul.f32 0.03125, %v145_v4 }
  0xcb   :  { %v152_v6 = vsub.f32 %v3402_v0, %v150_v5 }
  0xcc   :  { %v148_v7 = vpop.xlane.xlu0 %147 }
  0xcd   :  { %v151_v8 = vmul.f32 0.03125, %v148_v7  ;;  %v154_v9 = vmul.f32 %v152_v6, %v152_v6 }
  0xcf   :  { %v153_v10 = vsub.f32 %v3405_v1, %v151_v8  ;;  %v156_v11 = vsel %vm142_vm0, %v154_v9, 0.0 }
  0xd0   :  { %157 = vadd.xlane.f32.xlu1 %v156_v11 }
  0xd1   :  { %v155_v12 = vmul.f32 %v153_v10, %v153_v10 }
  0xd3   :  { %v159_v13 = vsel %vm142_vm0, %v155_v12, 0.0 }
  0xd4   :  { %160 = vadd.xlane.f32.xlu1 %v159_v13 }
 0x15d   :  { %v158_v19 = vpop.xlane.xlu1 %157 }
 0x15e   :  { %v162_v20 = vmul.f32 0.03125, %v158_v19 }
 0x160   :  { %v164_v21 = vadd.f32 1e-05, %v162_v20 }
 0x161   :  { %v161_v22 = vpop.xlane.xlu1 %160 }
 0x162   :  { %3081 = vrsqrt.f32 %v164_v21  ;;  %v163_v23 = vmul.f32 0.03125, %v161_v22 }
 0x164   :  { %v165_v24 = vadd.f32 1e-05, %v163_v23 }
 0x166   :  { %3083 = vrsqrt.f32 %v165_v24  ;;  %v3478_v24 = vld [vmem:[%s3244_s9] sm:$0xff] }
 0x16c   :  { %v3082_v25 = vpop.eup %3081 }
 0x16d   :  { %v168_v26 = vmul.f32 %v3082_v25, %v152_v6 }
 0x16f   :  { %v176_v30 = vmul.f32 %v2492_v27, %v168_v26 }
 0x170   :  { %v3084_v28 = vpop.eup %3083 }
 0x171   :  { %v169_v29 = vmul.f32 %v3084_v28, %v153_v10  ;;  %v184_v33 = vadd.f32 %v2493_v31, %v176_v30  ;;  %v3481_v28 = vld [vmem:[%s3244_s9 + $0x8] sm:$0xff]  ;;  %s3226_s9 = smov 8  }
 0x173   :  { %v177_v32 = vmul.f32 %v2492_v27, %v169_v29 }
 0x175   :  { %v185_v34 = vadd.f32 %v2493_v31, %v177_v32 }
 0x177   :  { %v186_v36 = vpack.c.bf16 %v185_v34, %v184_v33 }
 0x179   :  { %2662 = vmatmul.mubr.msk.bf16.vlgmr.msra.gmra.mrb[0].mxu1 %vm142_vm0, %v186_v36  ;;  %2678 = vmatmul.mubr.msk.bf16.vlgmr.msra.gmra.mrb[0].mxu0 %vm142_vm0, %v186_v36 }
 0x17a   :  { %2666 = vmatpush3.bf16.msra.mxu1 %v3047_v35  ;;  %2669 = vmatprep.mubr.msk.bf16.mxu1 %vm3222_vm1, %v3221_v16 }
 0x17b   :  { %2667 = vmatprep.subr.bf16.mxu1 %v3221_v16  ;;  %2689 = vmatprep.mubr.msk.bf16.mxu0 %vm3222_vm1, %v3221_v16 }
 0x17e   :  { %2668 = vmatpush3.bf16.msra.mxu1 %v3048_v37 }
 0x17f   :  { %2681 = vmatprep.subr.bf16.mxu1 %v3221_v16 }
 0x181   :  { %2670 = vmatmul.mubr.msk.bf16.vlgmr.msra.gmra.mrb[4].mxu1 %vm142_vm0, %v186_v36 }
 0x182   :  { %2683 = vmatprep.mubr.msk.bf16.mxu1 %vm3222_vm1, %v3221_v16 }
 0x24c   :  { %v240_v38 = vpop.f32.mrb[0].mxu1  ;;  %v3444_v39 = vpop.f32.mrb[0].mxu0 }
 0x24d   :  { %v2663_v40 = vpop.f32.mrb[1].mxu1  ;;  %v2679_v41 = vpop.f32.mrb[1].mxu0 }
 0x24e   :  { %v243_v42 = vpop.f32.mrb[2].mxu1  ;;  %v357_v43 = vpop.f32.mrb[2].mxu0 }
 0x24f   :  { %v381_v44 = vpack.c.bf16 %v243_v42, %v240_v38  ;;  %v429_v45 = vpack.c.bf16 %v357_v43, %v3444_v39  ;;  %v2664_v46 = vpop.f32.mrb[3].mxu1  ;;  %v2680_v47 = vpop.f32.mrb[3].mxu0  ;;  %v2928_v48 = vpack.i.bf16 %v243_v42, %v240_v38  ;;  %v3448_v49 = vpack.i.bf16 %v357_v43, %v3444_v39 }
 0x251   :  { %2929 = vrot.lane.b32.xlu1 %v2928_v48, %s3223_s0 }
 0x254   :  { %v297_v50 = vpop.f32.mrb[4].mxu1 }
 0x255   :  { %v2671_v51 = vpop.f32.mrb[5].mxu1 }
 0x256   :  { %v300_v52 = vpop.f32.mrb[6].mxu1 }
 0x257   :  { %v2672_v53 = vpop.f32.mrb[7].mxu1  ;;  %v2933_v54 = vpack.i.bf16 %v300_v52, %v297_v50  ;;  %v405_v55 = vpack.c.bf16 %v300_v52, %v297_v50 }
 0x259   :  { %2934 = vrot.lane.b32.xlu1 %v2933_v54, %s3224_s5  ;;  %2924 = vrot.lane.b32.xlu0 %v2933_v54, %s3223_s0  ;;  %v438_v56 = vsel %vm433_vm2, %v405_v55, 0 }
 0x25a   :  { %2682 = vmatpush3.bf16.xpose.msra.mxu1 %v438_v56 }
 0x25b   :  { %2693 = vmatprep.subr.bf16.mxu1 %v3221_v16 }
 0x25d   :  { %2939 = vrot.lane.b32.xlu1 %v2933_v54, %s3225_s13  ;;  %2944 = vrot.lane.b32.xlu0 %v2928_v48, %s3224_s5 }
 0x261   :  { %2949 = vrot.lane.b32.xlu1 %v2928_v48, %s3225_s13  ;;  %2684 = vmatmul.mubr.msk.bf16.vlgmr.msra.gmra.mrb[8].mxu1 %vm433_vm2, %v381_v44 }
 0x262   :  { %2695 = vmatprep.mubr.msk.bf16.mxu1 %vm3222_vm1, %v3221_v16 }
 0x2c3   :  { %v2930_v57 = vpop.permute.xlu1 %2929 }
 0x2c4   :  { %v2932_v10 = vunpack.i.h.bf16 %v2930_v57  ;;  %v2931_v11 = vunpack.i.l.bf16 %v2930_v57 }
 0x2c6   :  { %v382_v15 = vpack.c.bf16 %v2932_v10, %v2931_v11 }
 0x2cb   :  { %v2935_v58 = vpop.permute.xlu1 %2934  ;;  %v2925_v59 = vpop.permute.xlu0 %2924 }
 0x2cc   :  { %v2937_v60 = vunpack.i.h.bf16 %v2935_v58  ;;  %v2936_v61 = vunpack.i.l.bf16 %v2935_v58  ;;  %v2927_v62 = vunpack.i.h.bf16 %v2925_v59  ;;  %v2926_v63 = vunpack.i.l.bf16 %v2925_v59 }
 0x2ce   :  { %v407_v2 = vpack.c.bf16 %v2937_v60, %v2936_v61  ;;  %v406_v3 = vpack.c.bf16 %v2927_v62, %v2926_v63 }
 0x2cf   :  { %v2940_v4 = vpop.permute.xlu1 %2939  ;;  %v2945_v5 = vpop.permute.xlu0 %2944 }
 0x2d0   :  { %v2942_v6 = vunpack.i.h.bf16 %v2940_v4  ;;  %v2941_v7 = vunpack.i.l.bf16 %v2940_v4  ;;  %v485_v8 = vsel %vm433_vm2, %v406_v3, 0  ;;  %v532_v9 = vsel %vm433_vm2, %v407_v2, 0 }
 0x2d1   :  { %2688 = vmatpush3.bf16.xpose.msra.mxu0 %v485_v8  ;;  %2694 = vmatpush3.bf16.xpose.msra.mxu1 %v532_v9  ;;  %v2947_v12 = vunpack.i.h.bf16 %v2945_v5  ;;  %v2946_v13 = vunpack.i.l.bf16 %v2945_v5 }
 0x2d2   :  { %2699 = vmatprep.subr.bf16.mxu0 %v3221_v16  ;;  %2705 = vmatprep.subr.bf16.mxu1 %v3221_v16  ;;  %v408_v14 = vpack.c.bf16 %v2942_v6, %v2941_v7 }
 0x2d3   :  { %v383_v17 = vpack.c.bf16 %v2947_v12, %v2946_v13  ;;  %v2950_v18 = vpop.permute.xlu1 %2949 }
 0x2d4   :  { %v579_v19 = vsel %vm433_vm2, %v408_v14, 0  ;;  %v2952_v20 = vunpack.i.h.bf16 %v2950_v18  ;;  %v2951_v21 = vunpack.i.l.bf16 %v2950_v18 }
 0x2d6   :  { %v384_v22 = vpack.c.bf16 %v2952_v20, %v2951_v21 }
 0x2d8   :  { %2690 = vmatmul.mubr.msk.bf16.vlgmr.msra.gmra.mrb[4].mxu0 %vm433_vm2, %v382_v15  ;;  %2696 = vmatmul.mubr.msk.bf16.vlgmr.msra.gmra.mrb[12].mxu1 %vm433_vm2, %v383_v17 }
 0x2d9   :  { %2700 = vmatpush3.bf16.xpose.msra.mxu0 %v579_v19  ;;  %2706 = vmatpush3.bf16.msra.mxu1 %v429_v45 }
 0x2da   :  { %2701 = vmatprep.mubr.msk.bf16.mxu0 %vm3222_vm1, %v3221_v16  ;;  %2707 = vmatprep.mubr.msk.bf16.mxu1 %vm3222_vm1, %v3221_v16 }
 0x2db   :  { %2717 = vmatprep.subr.bf16.mxu1 %v3221_v16  ;;  %2711 = vmatprep.subr.bf16.mxu0 %v3221_v16 }
 0x2e0   :  { %2702 = vmatmul.mubr.msk.bf16.vlgmr.msra.gmra.mrb[8].mxu0 %vm433_vm2, %v384_v22 }
 0x2e1   :  { %2713 = vmatprep.mubr.msk.bf16.mxu0 %vm3222_vm1, %v3221_v16 }
 0x334   :  { %v474_v23 = vpop.f32.mrb[8].mxu1 }
 0x335   :  { %v622_v25 = vmul.f32 0.35355338, %v474_v23  ;;  %v2685_v26 = vpop.f32.mrb[9].mxu1 }
 0x336   :  { %v477_v27 = vpop.f32.mrb[10].mxu1 }
 0x337   :  { %v623_v29 = vmul.f32 0.35355338, %v477_v27  ;;  %v2686_v30 = vpop.f32.mrb[11].mxu1  ;;  %v630_v31 = vadd.f32 %v622_v25, %v3478_v24 }
 0x339   :  { %v639_v32 = vsel %vm638_vm3, %v630_v31, -inf  ;;  %v631_v33 = vadd.f32 %v623_v29, %v3481_v28 }
 0x33a   :  { %640 = vmax.xlane.f32.xlu0 %v639_v32 }
 0x33b   :  { %v642_v34 = vsel %vm638_vm3, %v631_v33, -inf }
 0x33c   :  { %643 = vmax.xlane.f32.xlu1 %v642_v34 }
 0x3ab   :  { %v521_v35 = vpop.f32.mrb[4].mxu0  ;;  %v568_v36 = vpop.f32.mrb[12].mxu1 }
 0x3ac   :  { %v624_v37 = vmul.f32 0.35355338, %v521_v35  ;;  %v2691_v38 = vpop.f32.mrb[5].mxu0  ;;  %v2697_v39 = vpop.f32.mrb[13].mxu1  ;;  %v626_v47 = vmul.f32 0.35355338, %v568_v36 }
 0x3ad   :  { %v524_v40 = vpop.f32.mrb[6].mxu0  ;;  %v571_v41 = vpop.f32.mrb[14].mxu1 }
 0x3ae   :  { %v625_v42 = vmul.f32 0.35355338, %v524_v40  ;;  %v627_v43 = vmul.f32 0.35355338, %v571_v41  ;;  %v2692_v44 = vpop.f32.mrb[7].mxu0  ;;  %v2698_v45 = vpop.f32.mrb[15].mxu1  ;;  %v632_v46 = vadd.f32 %v624_v37, %v3478_v24  ;;  %v634_v57 = vadd.f32 %v626_v47, %v3478_v24 }
 0x3b0   :  { %v645_v48 = vsel %vm638_vm3, %v632_v46, -inf  ;;  %v635_v50 = vadd.f32 %v627_v43, %v3481_v28  ;;  %v633_v51 = vadd.f32 %v625_v42, %v3481_v28  ;;  %v651_v61 = vsel %vm638_vm3, %v634_v57, -inf }
 0x3b1   :  { %646 = vmax.xlane.f32.xlu0 %v645_v48 }
 0x3b2   :  { %v654_v52 = vsel %vm638_vm3, %v635_v50, -inf  ;;  %v648_v56 = vsel %vm638_vm3, %v633_v51, -inf }
 0x3b3   :  { %v615_v53 = vpop.f32.mrb[8].mxu0  ;;  %655 = vmax.xlane.f32.xlu1 %v654_v52 }
 0x3b4   :  { %v628_v54 = vmul.f32 0.35355338, %v615_v53  ;;  %v2703_v55 = vpop.f32.mrb[9].mxu0 }
 0x3b5   :  { %v618_v58 = vpop.f32.mrb[10].mxu0  ;;  %649 = vmax.xlane.f32.xlu0 %v648_v56 }
 0x3b6   :  { %v629_v59 = vmul.f32 0.35355338, %v618_v58  ;;  %v2704_v60 = vpop.f32.mrb[11].mxu0  ;;  %v636_v63 = vadd.f32 %v628_v54, %v3478_v24 }
 0x3b8   :  { %v3496_v62 = vadd.f32 %v629_v59, %v3481_v28  ;;  %v657_v3 = vsel %vm638_vm3, %v636_v63, -inf }
 0x3b9   :  { %652 = vmax.xlane.f32.xlu0 %v651_v61 }
 0x3ba   :  { %v660_v2 = vsel %vm638_vm3, %v3496_v62, -inf }
 0x3bb   :  { %661 = vmax.xlane.f32.xlu1 %v660_v2 }
 0x3bd   :  { %658 = vmax.xlane.f32.xlu0 %v657_v3 }
 0x3c7   :  { %v641_v4 = vpop.xlane.xlu0 %640 }
 0x3c8   :  { %v663_v5 = vsub.f32 %v630_v31, %v641_v4 }
 0x3c9   :  { %v644_v6 = vpop.xlane.xlu1 %643 }
 0x3ca   :  { %v671_v7 = vmul.f32 1.442695, %v663_v5  ;;  %v664_v8 = vsub.f32 %v631_v33, %v644_v6 }
 0x3cc   :  { %3085 = vpow2.f32 %v671_v7  ;;  %v673_v9 = vmul.f32 1.442695, %v664_v8 }
 0x3ce   :  { %3087 = vpow2.f32 %v673_v9 }
 0x3d6   :  { %v3086_v10 = vpop.eup %3085 }
 0x3d7   :  { %v687_v11 = vsel %vm638_vm3, %v3086_v10, 0.0 }
 0x3d8   :  { %v3088_v12 = vpop.eup %3087  ;;  %688 = vadd.xlane.f32.xlu0 %v687_v11 }
 0x3d9   :  { %v690_v13 = vsel %vm638_vm3, %v3088_v12, 0.0 }
 0x3da   :  { %691 = vadd.xlane.f32.xlu1 %v690_v13 }
 0x43e   :  { %v647_v14 = vpop.xlane.xlu0 %646 }
 0x43f   :  { %v665_v15 = vsub.f32 %v632_v46, %v647_v14 }
 0x440   :  { %v656_v17 = vpop.xlane.xlu1 %655 }
 0x441   :  { %v675_v18 = vmul.f32 1.442695, %v665_v15  ;;  %v668_v19 = vsub.f32 %v635_v50, %v656_v17 }
 0x442   :  { %v650_v20 = vpop.xlane.xlu0 %649 }
 0x443   :  { %3089 = vpow2.f32 %v675_v18  ;;  %v666_v21 = vsub.f32 %v633_v51, %v650_v20  ;;  %v681_v22 = vmul.f32 1.442695, %v668_v19 }
 0x445   :  { %v677_v23 = vmul.f32 1.442695, %v666_v21 }
 0x446   :  { %v653_v25 = vpop.xlane.xlu0 %652 }
 0x447   :  { %3091 = vpow2.f32 %v677_v23  ;;  %v667_v26 = vsub.f32 %v634_v57, %v653_v25 }
 0x448   :  { %3093 = vpow2.f32 %v681_v22  ;;  %v662_v42 = vpop.xlane.xlu1 %661 }
 0x449   :  { %v679_v27 = vmul.f32 1.442695, %v667_v26  ;;  %v670_v51 = vsub.f32 %v3496_v62, %v662_v42 }
 0x44a   :  { %v659_v29 = vpop.xlane.xlu0 %658 }
 0x44b   :  { %3095 = vpow2.f32 %v679_v27  ;;  %v669_v30 = vsub.f32 %v636_v63, %v659_v29  ;;  %v685_v52 = vmul.f32 1.442695, %v670_v51 }
 0x44d   :  { %v3090_v31 = vpop.eup %3089  ;;  %v683_v32 = vmul.f32 1.442695, %v669_v30 }
 0x44e   :  { %v693_v33 = vsel %vm638_vm3, %v3090_v31, 0.0 }
 0x44f   :  { %3097 = vpow2.f32 %v683_v32  ;;  %694 = vadd.xlane.f32.xlu0 %v693_v33  ;;  %v3049_v32 = vld [vmem:[%s3274_s3] sm:$0xff]  }
 0x451   :  { %v3092_v34 = vpop.eup %3091 }
 0x452   :  { %v696_v35 = vsel %vm638_vm3, %v3092_v34, 0.0  ;;  %v3094_v36 = vpop.eup %3093 }
 0x453   :  { %697 = vadd.xlane.f32.xlu1 %v696_v35  ;;  %v702_v39 = vsel %vm638_vm3, %v3094_v36, 0.0 }
 0x455   :  { %v3096_v37 = vpop.eup %3095 }
 0x456   :  { %v699_v38 = vsel %vm638_vm3, %v3096_v37, 0.0 }
 0x457   :  { %700 = vadd.xlane.f32.xlu0 %v699_v38  ;;  %703 = vadd.xlane.f32.xlu1 %v702_v39 }
 0x459   :  { %v3508_v40 = vpop.eup %3097 }
 0x45a   :  { %v705_v41 = vsel %vm638_vm3, %v3508_v40, 0.0 }
 0x45b   :  { %706 = vadd.xlane.f32.xlu0 %v705_v41 }
 0x465   :  { %v689_v43 = vpop.xlane.xlu0 %688 }
 0x466   :  { %3099 = vrcp.f32 %v689_v43  ;;  %v3050_v43 = vld [vmem:[%s3274_s3 + $0x8] sm:$0xff]   ;;  %s3814_s3 = sld [smem:[#allocation6_spill]] }
 0x467   :  { %v692_v44 = vpop.xlane.xlu1 %691 }
 0x468   :  { %3101 = vrcp.f32 %v692_v44  ;;  %2959 = vrot.lane.b32.xlu1 %v3448_v49, %s3224_s5 }
 0x469   :  { %3103 = vpow2.f32 %v685_v52 }
 0x470   :  { %v3100_v45 = vpop.eup %3099 }
 0x471   :  { %2954 = vrot.lane.b32.xlu0 %v3448_v49, %s3223_s0  ;;  %v719_v47 = vmul.f32 %v3100_v45, %v3086_v10 }
 0x472   :  { %v3102_v46 = vpop.eup %3101 }
 0x473   :  { %v720_v48 = vmul.f32 %v3102_v46, %v3088_v12  ;;  %v3104_v53 = vpop.eup %3103 }
 0x474   :  { %v708_v54 = vsel %vm638_vm3, %v3104_v53, 0.0 }
 0x475   :  { %v727_v50 = vpack.c.bf16 %v720_v48, %v719_v47 }
 0x477   :  { %2708 = vmatmul.mubr.msk.bf16.vlgmr.msra.gmra.mrb[16].mxu1 %vm638_vm3, %v727_v50 }
 0x478   :  { %2719 = vmatprep.mubr.msk.bf16.mxu1 %vm3222_vm1, %v3221_v16 }
 0x48c   :  { %709 = vadd.xlane.f32.xlu1 %v708_v54 }
 0x49d   :  { %2964 = vrot.lane.b32.xlu1 %v3448_v49, %s3225_s13 }
 0x4dc   :  { %v695_v55 = vpop.xlane.xlu0 %694 }
 0x4e0   :  { %v698_v56 = vpop.xlane.xlu1 %697 }
 0x4e1   :  { %3105 = vrcp.f32 %v698_v56 }
 0x4e2   :  { %3107 = vrcp.f32 %v695_v55 }
 0x4e4   :  { %v701_v57 = vpop.xlane.xlu0 %700  ;;  %v704_v58 = vpop.xlane.xlu1 %703 }
 0x4e5   :  { %3109 = vrcp.f32 %v701_v57 }
 0x4e6   :  { %3111 = vrcp.f32 %v704_v58 }
 0x4e8   :  { %v707_v59 = vpop.xlane.xlu0 %706  ;;  %v2960_v60 = vpop.permute.xlu1 %2959 }
 0x4e9   :  { %v2962_v61 = vunpack.i.h.bf16 %v2960_v60  ;;  %v2961_v62 = vunpack.i.l.bf16 %v2960_v60  ;;  %3113 = vrcp.f32 %v707_v59 }
 0x4eb   :  { %v3106_v63 = vpop.eup %3105  ;;  %v431_v2 = vpack.c.bf16 %v2962_v61, %v2961_v62 }
 0x4ec   :  { %v2955_v3 = vpop.permute.xlu0 %2954  ;;  %v3108_v4 = vpop.eup %3107  ;;  %v722_v49 = vmul.f32 %v3106_v63, %v3092_v34 }
 0x4ed   :  { %v2957_v5 = vunpack.i.h.bf16 %v2955_v3  ;;  %v2956_v6 = vunpack.i.l.bf16 %v2955_v3  ;;  %2718 = vmatpush3.bf16.msra.mxu1 %v431_v2  ;;  %v721_v10 = vmul.f32 %v3108_v4, %v3090_v31  ;;  %v2511_v4 = vld [vmem:[%s3279_s8] ss:$0 sm:$0xff]  ;;  %s3815_s8 = sld [smem:[#allocation7_spill]] }
 0x4ee   :  { %2729 = vmatprep.subr.bf16.mxu1 %v3221_v16 }
 0x4ef   :  { %v3110_v7 = vpop.eup %3109  ;;  %v430_v8 = vpack.c.bf16 %v2957_v5, %v2956_v6  ;;  %v728_v13 = vpack.c.bf16 %v722_v49, %v721_v10 }
 0x4f0   :  { %v3112_v9 = vpop.eup %3111  ;;  %v723_v11 = vmul.f32 %v3110_v7, %v3096_v37 }
 0x4f1   :  { %v724_v12 = vmul.f32 %v3112_v9, %v3094_v36  ;;  %2712 = vmatpush3.bf16.msra.mxu0 %v430_v8 }
 0x4f2   :  { %2723 = vmatprep.subr.bf16.mxu0 %v3221_v16 }
 0x4f3   :  { %v729_v14 = vpack.c.bf16 %v724_v12, %v723_v11  ;;  %v3114_v21 = vpop.eup %3113 }
 0x4f4   :  { %2714 = vmatmul.mubr.msk.bf16.vlgmr.msra.gmra.mrb[12].mxu0 %vm638_vm3, %v728_v13  ;;  %v725_v23 = vmul.f32 %v3114_v21, %v3508_v40 }
 0x4f5   :  { %2720 = vmatmul.mubr.msk.bf16.vlgmr.msra.gmra.mrb[20].mxu1 %vm638_vm3, %v729_v14  ;;  %2725 = vmatprep.mubr.msk.bf16.mxu0 %vm3222_vm1, %v3221_v16 }
 0x4f6   :  { %2733 = vmatprep.mubr.msk.bf16.mxu1 %vm3222_vm1, %v3221_v16  ;;  %2730 = vmatpush3.bf16.msra.mxu1 %v3049_v32  ;;  %v3058_v32 = vld [vmem:[%s3304_s6 + $0x28] sm:$0xff]  }
 0x4f7   :  { %2731 = vmatprep.subr.bf16.mxu1 %v3221_v16 }
 0x4fa   :  { %2732 = vmatpush3.bf16.msra.mxu1 %v3050_v43 }
 0x4fb   :  { %2745 = vmatprep.subr.bf16.mxu1 %v3221_v16 }
 0x519   :  { %v710_v15 = vpop.xlane.xlu1 %709 }
 0x51a   :  { %3115 = vrcp.f32 %v710_v15 }
 0x51d   :  { %v2965_v17 = vpop.permute.xlu1 %2964 }
 0x51e   :  { %v2967_v18 = vunpack.i.h.bf16 %v2965_v17  ;;  %v2966_v19 = vunpack.i.l.bf16 %v2965_v17 }
 0x520   :  { %v432_v20 = vpack.c.bf16 %v2967_v18, %v2966_v19 }
 0x522   :  { %2724 = vmatpush3.bf16.msra.mxu0 %v432_v20 }
 0x523   :  { %2737 = vmatprep.subr.bf16.mxu0 %v3221_v16 }
 0x524   :  { %v3116_v22 = vpop.eup %3115 }
 0x525   :  { %v726_v25 = vmul.f32 %v3116_v22, %v3104_v53 }
 0x527   :  { %v730_v26 = vpack.c.bf16 %v726_v25, %v725_v23  ;;  %v3051_v23 = vld [vmem:[%s3294_s24] sm:$0xff]   ;;  %v3052_v25 = vld [vmem:[%s3294_s24 + $0x8] sm:$0xff]   ;;  %s3818_s24 = sld [smem:[#allocation11_spill]] }
 0x529   :  { %2726 = vmatmul.mubr.msk.bf16.vlgmr.msra.gmra.mrb[16].mxu0 %vm638_vm3, %v730_v26  ;;  %v3053_v26 = vld [vmem:[%s3304_s6] sm:$0xff]  }
 0x52a   :  { %2741 = vmatprep.mubr.msk.bf16.mxu0 %vm3222_vm1, %v3221_v16  ;;  %2738 = vmatpush3.bf16.msra.mxu0 %v3051_v23 }
 0x52b   :  { %2739 = vmatprep.subr.bf16.mxu0 %v3221_v16 }
 0x52e   :  { %2740 = vmatpush3.bf16.msra.mxu0 %v3052_v25 }
 0x52f   :  { %2765 = vmatprep.subr.bf16.mxu0 %v3221_v16 }
 0x54a   :  { %v768_v27 = vpop.f32.mrb[16].mxu1 }
 0x54b   :  { %v2709_v29 = vpop.f32.mrb[17].mxu1 }
 0x54c   :  { %v771_v30 = vpop.f32.mrb[18].mxu1  ;;  %v3055_v29 = vld [vmem:[%s3304_s6 + $0x10] sm:$0xff]  }
 0x54d   :  { %v2710_v31 = vpop.f32.mrb[19].mxu1 }
 0x54e   :  { %v3057_v31 = vld [vmem:[%s3304_s6 + $0x20] sm:$0xff]  }
 0x5c7   :  { %v812_v33 = vpop.f32.mrb[12].mxu0 }
 0x5c8   :  { %v856_v34 = vpop.f32.mrb[20].mxu1  ;;  %v2715_v35 = vpop.f32.mrb[13].mxu0 }
 0x5c9   :  { %v2721_v36 = vpop.f32.mrb[21].mxu1  ;;  %v815_v37 = vpop.f32.mrb[14].mxu0 }
 0x5ca   :  { %v2968_v38 = vpack.i.bf16 %v815_v37, %v812_v33  ;;  %v859_v39 = vpop.f32.mrb[22].mxu1  ;;  %v2716_v40 = vpop.f32.mrb[15].mxu0 }
 0x5cb   :  { %v2973_v41 = vpack.i.bf16 %v859_v39, %v856_v34  ;;  %v2722_v42 = vpop.f32.mrb[23].mxu1 }
 0x5cc   :  { %2969 = vrot.lane.b32.xlu1 %v2968_v38, %s3226_s9 }
 0x5cd   :  { %2974 = vrot.lane.b32.xlu0 %v2973_v41, %s3227_s17  ;;  %v2515_v41 = vld [vmem:[%s3284_s14] ss:$0 sm:$0xff]  ;;  %s3816_s14 = sld [smem:[#allocation9_spill]] }
 0x5fc   :  { %v900_v44 = vpop.f32.mrb[16].mxu0 }
 0x5fd   :  { %v2727_v45 = vpop.f32.mrb[17].mxu0 }
 0x5fe   :  { %v903_v46 = vpop.f32.mrb[18].mxu0  ;;  %v2516_v45 = vld [vmem:[%s3289_s19] ss:$0 sm:$0xff]  ;;  %s3817_s19 = sld [smem:[#allocation10_spill]] }
 0x5ff   :  { %v2978_v47 = vpack.i.bf16 %v903_v46, %v900_v44  ;;  %v2728_v48 = vpop.f32.mrb[19].mxu0 }
 0x601   :  { %2979 = vrot.lane.b32.xlu1 %v2978_v47, %s3228_s21 }
 0x63e   :  { %v2970_v50 = vpop.permute.xlu1 %2969 }
 0x63f   :  { %v2972_v51 = vunpack.i.h.bf16 %v2970_v50  ;;  %v2971_v52 = vunpack.i.l.bf16 %v2970_v50  ;;  %v2975_v53 = vpop.permute.xlu0 %2974 }
 0x640   :  { %v2977_v54 = vunpack.i.h.bf16 %v2975_v53  ;;  %v2976_v55 = vunpack.i.l.bf16 %v2975_v53  ;;  %v2517_v53 = vld [vmem:[%s3299_s30] ss:$0 sm:$0xff]  ;;  %s3819_s30 = sld [smem:[#allocation12_spill]] }
 0x641   :  { %v931_v56 = vsel %vm433_vm2, %v768_v27, %v2971_v52  ;;  %v932_v57 = vsel %vm433_vm2, %v771_v30, %v2972_v51  ;;  %v3054_v27 = vld [vmem:[%s3304_s6 + $0x8] sm:$0xff]   ;;  %v3056_v30 = vld [vmem:[%s3304_s6 + $0x18] sm:$0xff]   ;;  %v3059_v51 = vld [vmem:[%s3304_s6 + $0x30] sm:$0xff]  }
 0x642   :  { %v934_v61 = vsel %vm638_vm3, %v932_v57, %v2977_v54  ;;  %v933_v62 = vsel %vm638_vm3, %v931_v56, %v2976_v55  ;;  %v3060_v52 = vld [vmem:[%s3304_s6 + $0x38] sm:$0xff]   ;;  %s3820_s6 = sld [smem:[#allocation15_spill]] }
 0x673   :  { %v2980_v58 = vpop.permute.xlu1 %2979 }
 0x674   :  { %v2982_v59 = vunpack.i.h.bf16 %v2980_v58  ;;  %v2981_v60 = vunpack.i.l.bf16 %v2980_v58 }
 0x676   :  { %v936_v63 = vsel %vm935_vm4, %v933_v62, %v2981_v60  ;;  %v937_v2 = vsel %vm935_vm4, %v934_v61, %v2982_v59 }
 0x677   :  { %v938_v3 = vpack.c.bf16 %v937_v2, %v936_v63  ;;  %v2521_v63 = vld [vmem:[%s3812_s25] ss:$0 sm:$0xff] }
 0x679   :  { %2734 = vmatmul.mubr.msk.bf16.vlgmr.msra.gmra.mrb[24].mxu1 %vm142_vm0, %v938_v3 }
 0x67a   :  { %2761 = vmatprep.mubr.msk.bf16.mxu1 %vm3222_vm1, %v3221_v16  ;;  %2746 = vmatpush3.bf16.msra.mxu1 %v3053_v26 }
 0x67b   :  { %2747 = vmatprep.subr.bf16.mxu1 %v3221_v16 }
 0x67e   :  { %2748 = vmatpush3.bf16.msra.mxu1 %v3054_v27 }
 0x67f   :  { %2749 = vmatprep.subr.bf16.mxu1 %v3221_v16 }
 0x682   :  { %2750 = vmatpush3.bf16.msra.mxu1 %v3055_v29 }
 0x683   :  { %2751 = vmatprep.subr.bf16.mxu1 %v3221_v16 }
 0x686   :  { %2752 = vmatpush3.bf16.msra.mxu1 %v3056_v30 }
 0x687   :  { %2753 = vmatprep.subr.bf16.mxu1 %v3221_v16 }
 0x68a   :  { %2754 = vmatpush3.bf16.msra.mxu1 %v3057_v31  ;;  %v2530_v31 = vld [vmem:[%s3814_s3] ss:$0 sm:$0xff] }
 0x68b   :  { %2755 = vmatprep.subr.bf16.mxu1 %v3221_v16 }
 0x68e   :  { %2756 = vmatpush3.bf16.msra.mxu1 %v3058_v32 }
 0x68f   :  { %2757 = vmatprep.subr.bf16.mxu1 %v3221_v16 }
 0x692   :  { %2758 = vmatpush3.bf16.msra.mxu1 %v3059_v51 }
 0x693   :  { %2759 = vmatprep.subr.bf16.mxu1 %v3221_v16 }
 0x696   :  { %2760 = vmatpush3.bf16.msra.mxu1 %v3060_v52 }
 0x697   :  { %2795 = vmatprep.subr.bf16.mxu1 %v3221_v16 }
 0x74c   :  { %v999_v5 = vpop.f32.mrb[24].mxu1 }
 0x74d   :  { %v1000_v6 = vadd.f32 %v2511_v4, %v999_v5  ;;  %v2735_v49 = vpop.f32.mrb[25].mxu1 }
 0x74e   :  { %v1002_v7 = vpop.f32.mrb[26].mxu1 }
 0x74f   :  { %v3554_v8 = vadd.f32 %v1000_v6, %v3402_v0  ;;  %v1003_v9 = vadd.f32 %v2511_v4, %v1002_v7  ;;  %v2736_v10 = vpop.f32.mrb[27].mxu1 }
 0x751   :  { %v3557_v11 = vadd.f32 %v1003_v9, %v3405_v1  ;;  %v1010_v12 = vsel %vm142_vm0, %v3554_v8, 0.0 }
 0x752   :  { %1011 = vadd.xlane.f32.xlu0 %v1010_v12 }
 0x753   :  { %v1013_v13 = vsel %vm142_vm0, %v3557_v11, 0.0 }
 0x754   :  { %1014 = vadd.xlane.f32.xlu1 %v1013_v13 }
 0x7df   :  { %v1012_v14 = vpop.xlane.xlu0 %1011 }
 0x7e0   :  { %v1016_v15 = vmul.f32 0.03125, %v1012_v14 }
 0x7e1   :  { %v1015_v17 = vpop.xlane.xlu1 %1014 }
 0x7e2   :  { %v1018_v0 = vsub.f32 %v3554_v8, %v1016_v15  ;;  %v1017_v18 = vmul.f32 0.03125, %v1015_v17 }
 0x7e4   :  { %v1019_v1 = vsub.f32 %v3557_v11, %v1017_v18  ;;  %v1020_v19 = vmul.f32 %v1018_v0, %v1018_v0 }
 0x7e6   :  { %v1022_v20 = vsel %vm142_vm0, %v1020_v19, 0.0  ;;  %v1021_v21 = vmul.f32 %v1019_v1, %v1019_v1 }
 0x7e7   :  { %1023 = vadd.xlane.f32.xlu0 %v1022_v20  ;;  %v3061_v20 = vld [vmem:[%s3813_s29] sm:$0xff]  }
 0x7e8   :  { %v1025_v22 = vsel %vm142_vm0, %v1021_v21, 0.0  ;;  %v3062_v21 = vld [vmem:[%s3813_s29 + $0x8] sm:$0xff]  }
 0x7eb   :  { %1026 = vadd.xlane.f32.xlu0 %v1025_v22 }
 0x874   :  { %v1024_v33 = vpop.xlane.xlu0 %1023 }
 0x875   :  { %v1028_v34 = vmul.f32 0.03125, %v1024_v33 }
 0x877   :  { %v1030_v35 = vadd.f32 1e-05, %v1028_v34 }
 0x878   :  { %v1027_v36 = vpop.xlane.xlu0 %1026 }
 0x879   :  { %3117 = vrsqrt.f32 %v1030_v35  ;;  %v1029_v37 = vmul.f32 0.03125, %v1027_v36  ;;  %v2531_v36 = vld [vmem:[%s3815_s8] ss:$0 sm:$0xff] }
 0x87b   :  { %v1031_v38 = vadd.f32 1e-05, %v1029_v37 }
 0x87d   :  { %3119 = vrsqrt.f32 %v1031_v38 }
 0x883   :  { %v3118_v39 = vpop.eup %3117 }
 0x884   :  { %v1034_v40 = vmul.f32 %v3118_v39, %v1018_v0 }
 0x886   :  { %v1042_v43 = vmul.f32 %v2515_v41, %v1034_v40  ;;  %v3063_v40 = vld [vmem:[%s3816_s14] sm:$0xff]  }
 0x887   :  { %v3120_v42 = vpop.eup %3119 }
 0x888   :  { %v1035_v44 = vmul.f32 %v3120_v42, %v1019_v1  ;;  %v1050_v47 = vadd.f32 %v2516_v45, %v1042_v43  ;;  %v3064_v42 = vld [vmem:[%s3816_s14 + $0x8] sm:$0xff]   ;;  %v3065_v43 = vld [vmem:[%s3817_s19] sm:$0xff]  }
 0x88a   :  { %v1043_v46 = vmul.f32 %v2515_v41, %v1035_v44  ;;  %v3066_v44 = vld [vmem:[%s3817_s19 + $0x8] sm:$0xff]  }
 0x88c   :  { %v1051_v48 = vadd.f32 %v2516_v45, %v1043_v46 }
 0x88e   :  { %v1052_v50 = vpack.c.bf16 %v1051_v48, %v1050_v47 }
 0x890   :  { %2742 = vmatmul.mubr.msk.bf16.vlgmr.msra.gmra.mrb[20].mxu0 %vm142_vm0, %v1052_v50 }
 0x891   :  { %2769 = vmatprep.mubr.msk.bf16.mxu0 %vm3222_vm1, %v3221_v16  ;;  %2766 = vmatpush3.bf16.msra.mxu0 %v3061_v20 }
 0x892   :  { %2767 = vmatprep.subr.bf16.mxu0 %v3221_v16 }
 0x895   :  { %2768 = vmatpush3.bf16.msra.mxu0 %v3062_v21 }
 0x896   :  { %2773 = vmatprep.subr.bf16.mxu0 %v3221_v16 }
 0x963   :  { %v1113_v54 = vpop.f32.mrb[20].mxu0 }
 0x964   :  { %v1114_v55 = vadd.f32 %v2517_v53, %v1113_v54  ;;  %v2743_v56 = vpop.f32.mrb[21].mxu0 }
 0x965   :  { %v1116_v57 = vpop.f32.mrb[22].mxu0 }
 0x966   :  { %v1117_v58 = vadd.f32 %v2517_v53, %v1116_v57  ;;  %v2744_v59 = vpop.f32.mrb[23].mxu0  ;;  %v1120_v60 = vmax.f32 %v1114_v55, 0.0 }
 0x968   :  { %v1121_v61 = vmax.f32 %v1117_v58, 0.0 }
 0x96a   :  { %v1122_v62 = vpack.c.bf16 %v1121_v61, %v1120_v60 }
 0x96c   :  { %2762 = vmatmul.mubr.bf16.vlgmr.msra.gmra.mrb[28].mxu1 %v1122_v62 }
 0x96d   :  { %2797 = vmatprep.mubr.msk.bf16.mxu1 %vm3222_vm1, %v3221_v16 }
 0xa3f   :  { %v1228_v2 = vpop.f32.mrb[28].mxu1 }
 0xa40   :  { %v1229_v3 = vadd.f32 %v2521_v63, %v1228_v2  ;;  %v2763_v4 = vpop.f32.mrb[29].mxu1 }
 0xa41   :  { %v1231_v5 = vpop.f32.mrb[30].mxu1 }
 0xa42   :  { %v3597_v6 = vadd.f32 %v1229_v3, %v3554_v8  ;;  %v1232_v49 = vadd.f32 %v2521_v63, %v1231_v5  ;;  %v2764_v7 = vpop.f32.mrb[31].mxu1 }
 0xa44   :  { %v3600_v9 = vadd.f32 %v1232_v49, %v3557_v11  ;;  %v1239_v10 = vsel %vm142_vm0, %v3597_v6, 0.0 }
 0xa45   :  { %1240 = vadd.xlane.f32.xlu0 %v1239_v10 }
 0xa46   :  { %v1242_v12 = vsel %vm142_vm0, %v3600_v9, 0.0 }
 0xa47   :  { %1243 = vadd.xlane.f32.xlu1 %v1242_v12 }
 0xad2   :  { %v1241_v13 = vpop.xlane.xlu0 %1240 }
 0xad3   :  { %v1245_v14 = vmul.f32 0.03125, %v1241_v13 }
 0xad4   :  { %v1244_v15 = vpop.xlane.xlu1 %1243 }
 0xad5   :  { %v1247_v8 = vsub.f32 %v3597_v6, %v1245_v14  ;;  %v1246_v17 = vmul.f32 0.03125, %v1244_v15 }
 0xad7   :  { %v1248_v0 = vsub.f32 %v3600_v9, %v1246_v17  ;;  %v1249_v11 = vmul.f32 %v1247_v8, %v1247_v8 }
 0xad9   :  { %v1251_v18 = vsel %vm142_vm0, %v1249_v11, 0.0  ;;  %v1250_v1 = vmul.f32 %v1248_v0, %v1248_v0 }
 0xada   :  { %1252 = vadd.xlane.f32.xlu0 %v1251_v18 }
 0xadb   :  { %v1254_v19 = vsel %vm142_vm0, %v1250_v1, 0.0 }
 0xadc   :  { %1255 = vadd.xlane.f32.xlu1 %v1254_v19 }
 0xb67   :  { %v1253_v22 = vpop.xlane.xlu0 %1252 }
 0xb68   :  { %v1257_v23 = vmul.f32 0.03125, %v1253_v22 }
 0xb69   :  { %v1256_v25 = vpop.xlane.xlu1 %1255 }
 0xb6a   :  { %v1259_v26 = vadd.f32 1e-05, %v1257_v23  ;;  %v1258_v27 = vmul.f32 0.03125, %v1256_v25 }
 0xb6c   :  { %3121 = vrsqrt.f32 %v1259_v26  ;;  %v1260_v29 = vadd.f32 1e-05, %v1258_v27 }
 0xb6e   :  { %3123 = vrsqrt.f32 %v1260_v29 }
 0xb76   :  { %v3122_v30 = vpop.eup %3121 }
 0xb77   :  { %v1263_v32 = vmul.f32 %v3122_v30, %v1247_v8 }
 0xb78   :  { %v3124_v33 = vpop.eup %3123 }
 0xb79   :  { %v1271_v34 = vmul.f32 %v2530_v31, %v1263_v32  ;;  %v1264_v35 = vmul.f32 %v3124_v33, %v1248_v0 }
 0xb7b   :  { %v1272_v37 = vmul.f32 %v2530_v31, %v1264_v35  ;;  %v1279_v38 = vadd.f32 %v2531_v36, %v1271_v34 }
 0xb7d   :  { %v1280_v39 = vadd.f32 %v2531_v36, %v1272_v37 }
 0xb7f   :  { %v1281_v41 = vpack.c.bf16 %v1280_v39, %v1279_v38 }
 0xb81   :  { %2770 = vmatmul.mubr.msk.bf16.vlgmr.msra.gmra.mrb[24].mxu0 %vm142_vm0, %v1281_v41 }
 0xb82   :  { %2774 = vmatpush3.bf16.msra.mxu0 %v3063_v40  ;;  %2777 = vmatprep.mubr.msk.bf16.mxu0 %vm3222_vm1, %v3221_v16 }
 0xb83   :  { %2775 = vmatprep.subr.bf16.mxu0 %v3221_v16 }
 0xb86   :  { %2776 = vmatpush3.bf16.msra.mxu0 %v3064_v42 }
 0xb87   :  { %2781 = vmatprep.subr.bf16.mxu0 %v3221_v16 }
 0xb89   :  { %2778 = vmatmul.mubr.msk.bf16.vlgmr.msra.gmra.mrb[28].mxu0 %vm142_vm0, %v1281_v41 }
 0xb8a   :  { %2782 = vmatpush3.bf16.msra.mxu0 %v3065_v43  ;;  %2785 = vmatprep.mubr.msk.bf16.mxu0 %vm3222_vm1, %v3221_v16 }
 0xb8b   :  { %2783 = vmatprep.subr.bf16.mxu0 %v3221_v16 }
 0xb8e   :  { %2784 = vmatpush3.bf16.msra.mxu0 %v3066_v44 }
 0xb8f   :  { %2789 = vmatprep.subr.bf16.mxu0 %v3221_v16 }
 0xb91   :  { %2786 = vmatmul.mubr.msk.bf16.vlgmr.msra.gmra.mrb[32].mxu0 %vm142_vm0, %v1281_v41 }
 0xb92   :  { %2791 = vmatprep.mubr.msk.bf16.mxu0 %vm3222_vm1, %v3221_v16 }
 0xc54   :  { %v1335_v45 = vpop.f32.mrb[24].mxu0 }
 0xc55   :  { %v2771_v46 = vpop.f32.mrb[25].mxu0 }
 0xc56   :  { %v1338_v47 = vpop.f32.mrb[26].mxu0 }
 0xc57   :  { %v1476_v48 = vpack.c.bf16 %v1338_v47, %v1335_v45  ;;  %v2772_v50 = vpop.f32.mrb[27].mxu0  ;;  %v2988_v51 = vpack.i.bf16 %v1338_v47, %v1335_v45 }
 0xc59   :  { %2989 = vrot.lane.b32.xlu1 %v2988_v51, %s3223_s0 }
 0xc5c   :  { %v1392_v52 = vpop.f32.mrb[28].mxu0 }
 0xc5d   :  { %v2779_v53 = vpop.f32.mrb[29].mxu0 }
 0xc5e   :  { %v1395_v54 = vpop.f32.mrb[30].mxu0 }
 0xc5f   :  { %v2780_v55 = vpop.f32.mrb[31].mxu0  ;;  %v2993_v56 = vpack.i.bf16 %v1395_v54, %v1392_v52  ;;  %v1500_v57 = vpack.c.bf16 %v1395_v54, %v1392_v52 }
 0xc61   :  { %2994 = vrot.lane.b32.xlu1 %v2993_v56, %s3224_s5  ;;  %2984 = vrot.lane.b32.xlu0 %v2993_v56, %s3223_s0  ;;  %v1532_v58 = vsel %vm433_vm2, %v1500_v57, 0 }
 0xc62   :  { %2790 = vmatpush3.bf16.xpose.msra.mxu0 %v1532_v58 }
 0xc63   :  { %2801 = vmatprep.subr.bf16.mxu0 %v3221_v16 }
 0xc64   :  { %v1449_v59 = vpop.f32.mrb[32].mxu0 }
 0xc65   :  { %2999 = vrot.lane.b32.xlu1 %v2993_v56, %s3225_s13  ;;  %3004 = vrot.lane.b32.xlu0 %v2988_v51, %s3224_s5  ;;  %v2787_v60 = vpop.f32.mrb[33].mxu0 }
 0xc66   :  { %v1452_v61 = vpop.f32.mrb[34].mxu0 }
 0xc67   :  { %v1524_v62 = vpack.c.bf16 %v1452_v61, %v1449_v59  ;;  %v2788_v63 = vpop.f32.mrb[35].mxu0  ;;  %v3640_v2 = vpack.i.bf16 %v1452_v61, %v1449_v59 }
 0xc69   :  { %3009 = vrot.lane.b32.xlu1 %v2988_v51, %s3225_s13  ;;  %2792 = vmatmul.mubr.msk.bf16.vlgmr.msra.gmra.mrb[36].mxu0 %vm433_vm2, %v1476_v48 }
 0xc6a   :  { %2803 = vmatprep.mubr.msk.bf16.mxu0 %vm3222_vm1, %v3221_v16 }
 0xccb   :  { %v2990_v3 = vpop.permute.xlu1 %2989 }
 0xccc   :  { %v2992_v1 = vunpack.i.h.bf16 %v2990_v3  ;;  %v2991_v19 = vunpack.i.l.bf16 %v2990_v3 }
 0xcce   :  { %v1477_v23 = vpack.c.bf16 %v2992_v1, %v2991_v19 }
 0xcd3   :  { %v2995_v4 = vpop.permute.xlu1 %2994  ;;  %v2985_v5 = vpop.permute.xlu0 %2984 }
 0xcd4   :  { %v2997_v49 = vunpack.i.h.bf16 %v2995_v4  ;;  %v2996_v7 = vunpack.i.l.bf16 %v2995_v4  ;;  %v2987_v10 = vunpack.i.h.bf16 %v2985_v5  ;;  %v2986_v12 = vunpack.i.l.bf16 %v2985_v5 }
 0xcd6   :  { %v1502_v13 = vpack.c.bf16 %v2997_v49, %v2996_v7  ;;  %v1501_v14 = vpack.c.bf16 %v2987_v10, %v2986_v12 }
 0xcd7   :  { %v3000_v15 = vpop.permute.xlu1 %2999  ;;  %v3005_v8 = vpop.permute.xlu0 %3004 }
 0xcd8   :  { %v3002_v17 = vunpack.i.h.bf16 %v3000_v15  ;;  %v3001_v0 = vunpack.i.l.bf16 %v3000_v15  ;;  %v1579_v11 = vsel %vm433_vm2, %v1501_v14, 0  ;;  %v1626_v18 = vsel %vm433_vm2, %v1502_v13, 0 }
 0xcd9   :  { %2796 = vmatpush3.bf16.xpose.msra.mxu1 %v1579_v11  ;;  %2802 = vmatpush3.bf16.xpose.msra.mxu0 %v1626_v18  ;;  %v3007_v20 = vunpack.i.h.bf16 %v3005_v8  ;;  %v3006_v21 = vunpack.i.l.bf16 %v3005_v8 }
 0xcda   :  { %2807 = vmatprep.subr.bf16.mxu1 %v3221_v16  ;;  %2813 = vmatprep.subr.bf16.mxu0 %v3221_v16  ;;  %v1503_v22 = vpack.c.bf16 %v3002_v17, %v3001_v0 }
 0xcdb   :  { %v1478_v25 = vpack.c.bf16 %v3007_v20, %v3006_v21  ;;  %v3010_v26 = vpop.permute.xlu1 %3009 }
 0xcdc   :  { %v1673_v27 = vsel %vm433_vm2, %v1503_v22, 0  ;;  %v3012_v29 = vunpack.i.h.bf16 %v3010_v26  ;;  %v3011_v30 = vunpack.i.l.bf16 %v3010_v26 }
 0xcde   :  { %v1479_v31 = vpack.c.bf16 %v3012_v29, %v3011_v30 }
 0xce0   :  { %2798 = vmatmul.mubr.msk.bf16.vlgmr.msra.gmra.mrb[32].mxu1 %vm433_vm2, %v1477_v23  ;;  %2804 = vmatmul.mubr.msk.bf16.vlgmr.msra.gmra.mrb[40].mxu0 %vm433_vm2, %v1478_v25 }
 0xce1   :  { %2808 = vmatpush3.bf16.xpose.msra.mxu1 %v1673_v27  ;;  %2814 = vmatpush3.bf16.msra.mxu0 %v1524_v62 }
 0xce2   :  { %2809 = vmatprep.mubr.msk.bf16.mxu1 %vm3222_vm1, %v3221_v16  ;;  %2815 = vmatprep.mubr.msk.bf16.mxu0 %vm3222_vm1, %v3221_v16 }
 0xce3   :  { %2825 = vmatprep.subr.bf16.mxu0 %v3221_v16  ;;  %2819 = vmatprep.subr.bf16.mxu1 %v3221_v16 }
 0xce8   :  { %2810 = vmatmul.mubr.msk.bf16.vlgmr.msra.gmra.mrb[36].mxu1 %vm433_vm2, %v1479_v31 }
 0xce9   :  { %2821 = vmatprep.mubr.msk.bf16.mxu1 %vm3222_vm1, %v3221_v16 }
 0xd3c   :  { %v1568_v32 = vpop.f32.mrb[36].mxu0 }
 0xd3d   :  { %v1716_v33 = vmul.f32 0.35355338, %v1568_v32  ;;  %v2793_v34 = vpop.f32.mrb[37].mxu0 }
 0xd3e   :  { %v1571_v35 = vpop.f32.mrb[38].mxu0 }
 0xd3f   :  { %v1717_v36 = vmul.f32 0.35355338, %v1571_v35  ;;  %v2794_v37 = vpop.f32.mrb[39].mxu0  ;;  %v1724_v38 = vadd.f32 %v1716_v33, %v3478_v24 }
 0xd41   :  { %v1732_v39 = vsel %vm638_vm3, %v1724_v38, -inf  ;;  %v1725_v40 = vadd.f32 %v1717_v36, %v3481_v28 }
 0xd42   :  { %1733 = vmax.xlane.f32.xlu0 %v1732_v39 }
 0xd43   :  { %v1735_v41 = vsel %vm638_vm3, %v1725_v40, -inf }
 0xd44   :  { %1736 = vmax.xlane.f32.xlu1 %v1735_v41 }
 0xdb3   :  { %v1615_v42 = vpop.f32.mrb[32].mxu1  ;;  %v1662_v43 = vpop.f32.mrb[40].mxu0 }
 0xdb4   :  { %v1718_v44 = vmul.f32 0.35355338, %v1615_v42  ;;  %v2799_v45 = vpop.f32.mrb[33].mxu1  ;;  %v2805_v46 = vpop.f32.mrb[41].mxu0  ;;  %v1720_v55 = vmul.f32 0.35355338, %v1662_v43 }
 0xdb5   :  { %v1618_v47 = vpop.f32.mrb[34].mxu1  ;;  %v1665_v48 = vpop.f32.mrb[42].mxu0 }
 0xdb6   :  { %v1719_v50 = vmul.f32 0.35355338, %v1618_v47  ;;  %v1721_v51 = vmul.f32 0.35355338, %v1665_v48  ;;  %v2800_v52 = vpop.f32.mrb[35].mxu1  ;;  %v2806_v53 = vpop.f32.mrb[43].mxu0  ;;  %v1726_v54 = vadd.f32 %v1718_v44, %v3478_v24  ;;  %v1728_v3 = vadd.f32 %v1720_v55, %v3478_v24 }
 0xdb8   :  { %v1738_v56 = vsel %vm638_vm3, %v1726_v54, -inf  ;;  %v1729_v57 = vadd.f32 %v1721_v51, %v3481_v28  ;;  %v1727_v58 = vadd.f32 %v1719_v50, %v3481_v28  ;;  %v1744_v7 = vsel %vm638_vm3, %v1728_v3, -inf }
 0xdb9   :  { %1739 = vmax.xlane.f32.xlu0 %v1738_v56 }
 0xdba   :  { %v1747_v59 = vsel %vm638_vm3, %v1729_v57, -inf  ;;  %v1741_v63 = vsel %vm638_vm3, %v1727_v58, -inf }
 0xdbb   :  { %1748 = vmax.xlane.f32.xlu1 %v1747_v59  ;;  %v1709_v60 = vpop.f32.mrb[36].mxu1 }
 0xdbc   :  { %v1722_v61 = vmul.f32 0.35355338, %v1709_v60  ;;  %v2811_v62 = vpop.f32.mrb[37].mxu1 }
 0xdbd   :  { %1742 = vmax.xlane.f32.xlu0 %v1741_v63  ;;  %v1712_v4 = vpop.f32.mrb[38].mxu1 }
 0xdbe   :  { %v1723_v5 = vmul.f32 0.35355338, %v1712_v4  ;;  %v2812_v49 = vpop.f32.mrb[39].mxu1  ;;  %v1730_v12 = vadd.f32 %v1722_v61, %v3478_v24 }
 0xdc0   :  { %v3675_v10 = vadd.f32 %v1723_v5, %v3481_v28  ;;  %v1750_v14 = vsel %vm638_vm3, %v1730_v12, -inf }
 0xdc1   :  { %1745 = vmax.xlane.f32.xlu0 %v1744_v7 }
 0xdc2   :  { %v1753_v13 = vsel %vm638_vm3, %v3675_v10, -inf }
 0xdc3   :  { %1754 = vmax.xlane.f32.xlu1 %v1753_v13 }
 0xdc5   :  { %1751 = vmax.xlane.f32.xlu0 %v1750_v14 }
 0xdcf   :  { %v1734_v15 = vpop.xlane.xlu0 %1733 }
 0xdd0   :  { %v1756_v8 = vsub.f32 %v1724_v38, %v1734_v15 }
 0xdd1   :  { %v1737_v17 = vpop.xlane.xlu1 %1736 }
 0xdd2   :  { %v1764_v0 = vmul.f32 1.442695, %v1756_v8  ;;  %v1757_v11 = vsub.f32 %v1725_v40, %v1737_v17 }
 0xdd4   :  { %3125 = vpow2.f32 %v1764_v0  ;;  %v1766_v18 = vmul.f32 1.442695, %v1757_v11 }
 0xdd6   :  { %3127 = vpow2.f32 %v1766_v18 }
 0xdde   :  { %v3126_v28 = vpop.eup %3125 }
 0xddf   :  { %v1780_v1 = vsel %vm638_vm3, %v3126_v28, 0.0 }
 0xde0   :  { %v3128_v24 = vpop.eup %3127  ;;  %1781 = vadd.xlane.f32.xlu0 %v1780_v1 }
 0xde1   :  { %v1783_v19 = vsel %vm638_vm3, %v3128_v24, 0.0 }
 0xde2   :  { %1784 = vadd.xlane.f32.xlu1 %v1783_v19 }
 0xe46   :  { %v1740_v20 = vpop.xlane.xlu0 %1739 }
 0xe47   :  { %v1758_v21 = vsub.f32 %v1726_v54, %v1740_v20 }
 0xe48   :  { %v1749_v22 = vpop.xlane.xlu1 %1748 }
 0xe49   :  { %v1768_v23 = vmul.f32 1.442695, %v1758_v21  ;;  %v1761_v25 = vsub.f32 %v1729_v57, %v1749_v22 }
 0xe4a   :  { %v1743_v26 = vpop.xlane.xlu0 %1742 }
 0xe4b   :  { %3129 = vpow2.f32 %v1768_v23  ;;  %v1759_v27 = vsub.f32 %v1727_v58, %v1743_v26  ;;  %v1774_v29 = vmul.f32 1.442695, %v1761_v25 }
 0xe4d   :  { %v1770_v30 = vmul.f32 1.442695, %v1759_v27 }
 0xe4e   :  { %v1746_v31 = vpop.xlane.xlu0 %1745 }
 0xe4f   :  { %3131 = vpow2.f32 %v1770_v30  ;;  %v1760_v32 = vsub.f32 %v1728_v3, %v1746_v31 }
 0xe50   :  { %3133 = vpow2.f32 %v1774_v29  ;;  %v1755_v47 = vpop.xlane.xlu1 %1754 }
 0xe51   :  { %v1772_v33 = vmul.f32 1.442695, %v1760_v32  ;;  %v1763_v56 = vsub.f32 %v3675_v10, %v1755_v47 }
 0xe52   :  { %v1752_v34 = vpop.xlane.xlu0 %1751 }
 0xe53   :  { %3135 = vpow2.f32 %v1772_v33  ;;  %v1762_v35 = vsub.f32 %v1730_v12, %v1752_v34  ;;  %v1778_v57 = vmul.f32 1.442695, %v1763_v56 }
 0xe55   :  { %v3130_v36 = vpop.eup %3129  ;;  %v1776_v37 = vmul.f32 1.442695, %v1762_v35  ;;  %v3067_v35 = vld [vmem:[%s3818_s24] sm:$0xff]  }
 0xe56   :  { %v1786_v38 = vsel %vm638_vm3, %v3130_v36, 0.0 }
 0xe57   :  { %3137 = vpow2.f32 %v1776_v37  ;;  %1787 = vadd.xlane.f32.xlu0 %v1786_v38 }
 0xe59   :  { %v3132_v39 = vpop.eup %3131 }
 0xe5a   :  { %v1789_v40 = vsel %vm638_vm3, %v3132_v39, 0.0  ;;  %v3134_v41 = vpop.eup %3133 }
 0xe5b   :  { %1790 = vadd.xlane.f32.xlu1 %v1789_v40  ;;  %v1795_v44 = vsel %vm638_vm3, %v3134_v41, 0.0 }
 0xe5d   :  { %v3136_v42 = vpop.eup %3135 }
 0xe5e   :  { %v1792_v43 = vsel %vm638_vm3, %v3136_v42, 0.0 }
 0xe5f   :  { %1793 = vadd.xlane.f32.xlu0 %v1792_v43  ;;  %1796 = vadd.xlane.f32.xlu1 %v1795_v44 }
 0xe61   :  { %v3687_v45 = vpop.eup %3137 }
 0xe62   :  { %v1798_v46 = vsel %vm638_vm3, %v3687_v45, 0.0 }
 0xe63   :  { %1799 = vadd.xlane.f32.xlu0 %v1798_v46  ;;  %v3068_v46 = vld [vmem:[%s3818_s24 + $0x8] sm:$0xff]  }
 0xe6d   :  { %v1782_v48 = vpop.xlane.xlu0 %1781 }
 0xe6e   :  { %3139 = vrcp.f32 %v1782_v48 }
 0xe6f   :  { %v1785_v50 = vpop.xlane.xlu1 %1784 }
 0xe70   :  { %3141 = vrcp.f32 %v1785_v50  ;;  %3019 = vrot.lane.b32.xlu1 %v3640_v2, %s3224_s5 }
 0xe71   :  { %3143 = vpow2.f32 %v1778_v57 }
 0xe78   :  { %v3140_v51 = vpop.eup %3139 }
 0xe79   :  { %3014 = vrot.lane.b32.xlu0 %v3640_v2, %s3223_s0  ;;  %v1812_v53 = vmul.f32 %v3140_v51, %v3126_v28 }
 0xe7a   :  { %v3142_v52 = vpop.eup %3141 }
 0xe7b   :  { %v1813_v54 = vmul.f32 %v3142_v52, %v3128_v24  ;;  %v3144_v58 = vpop.eup %3143 }
 0xe7c   :  { %v1801_v59 = vsel %vm638_vm3, %v3144_v58, 0.0 }
 0xe7d   :  { %v1820_v55 = vpack.c.bf16 %v1813_v54, %v1812_v53 }
 0xe7f   :  { %2816 = vmatmul.mubr.msk.bf16.vlgmr.msra.gmra.mrb[44].mxu0 %vm638_vm3, %v1820_v55 }
 0xe80   :  { %2827 = vmatprep.mubr.msk.bf16.mxu0 %vm3222_vm1, %v3221_v16 }
 0xe94   :  { %1802 = vadd.xlane.f32.xlu1 %v1801_v59 }
 0xea5   :  { %3024 = vrot.lane.b32.xlu1 %v3640_v2, %s3225_s13 }
 0xee4   :  { %v1788_v60 = vpop.xlane.xlu0 %1787 }
 0xee8   :  { %v1791_v61 = vpop.xlane.xlu1 %1790 }
 0xee9   :  { %3145 = vrcp.f32 %v1791_v61 }
 0xeea   :  { %3147 = vrcp.f32 %v1788_v60 }
 0xeec   :  { %v1794_v62 = vpop.xlane.xlu0 %1793  ;;  %v1797_v63 = vpop.xlane.xlu1 %1796 }
 0xeed   :  { %3149 = vrcp.f32 %v1794_v62 }
 0xeee   :  { %3151 = vrcp.f32 %v1797_v63 }
 0xef0   :  { %v1800_v3 = vpop.xlane.xlu0 %1799  ;;  %v3020_v4 = vpop.permute.xlu1 %3019 }
 0xef1   :  { %v3022_v5 = vunpack.i.h.bf16 %v3020_v4  ;;  %v3021_v49 = vunpack.i.l.bf16 %v3020_v4  ;;  %3153 = vrcp.f32 %v1800_v3 }
 0xef3   :  { %v3146_v7 = vpop.eup %3145  ;;  %v1526_v10 = vpack.c.bf16 %v3022_v5, %v3021_v49 }
 0xef4   :  { %v3015_v12 = vpop.permute.xlu0 %3014  ;;  %v3148_v13 = vpop.eup %3147  ;;  %v1815_v2 = vmul.f32 %v3146_v7, %v3132_v39 }
 0xef5   :  { %v3017_v14 = vunpack.i.h.bf16 %v3015_v12  ;;  %v3016_v15 = vunpack.i.l.bf16 %v3015_v12  ;;  %2826 = vmatpush3.bf16.msra.mxu0 %v1526_v10  ;;  %v1814_v11 = vmul.f32 %v3148_v13, %v3130_v36  ;;  %v2549_v10 = vld [vmem:[%s3819_s30] ss:$0 sm:$0xff] }
 0xef6   :  { %2837 = vmatprep.subr.bf16.mxu0 %v3221_v16 }
 0xef7   :  { %v3150_v8 = vpop.eup %3149  ;;  %v1525_v17 = vpack.c.bf16 %v3017_v14, %v3016_v15  ;;  %v1821_v1 = vpack.c.bf16 %v1815_v2, %v1814_v11 }
 0xef8   :  { %v3152_v0 = vpop.eup %3151  ;;  %v1816_v18 = vmul.f32 %v3150_v8, %v3136_v42 }
 0xef9   :  { %v1817_v28 = vmul.f32 %v3152_v0, %v3134_v41  ;;  %2820 = vmatpush3.bf16.msra.mxu1 %v1525_v17 }
 0xefa   :  { %2831 = vmatprep.subr.bf16.mxu1 %v3221_v16 }
 0xefb   :  { %v1822_v24 = vpack.c.bf16 %v1817_v28, %v1816_v18  ;;  %v3154_v25 = vpop.eup %3153 }
 0xefc   :  { %2822 = vmatmul.mubr.msk.bf16.vlgmr.msra.gmra.mrb[40].mxu1 %vm638_vm3, %v1821_v1  ;;  %v1818_v27 = vmul.f32 %v3154_v25, %v3687_v45  ;;  %v3069_v25 = vld [vmem:[%s3820_s6] sm:$0xff]  }
 0xefd   :  { %2828 = vmatmul.mubr.msk.bf16.vlgmr.msra.gmra.mrb[48].mxu0 %vm638_vm3, %v1822_v24  ;;  %2833 = vmatprep.mubr.msk.bf16.mxu1 %vm3222_vm1, %v3221_v16 }
 0xefe   :  { %2841 = vmatprep.mubr.msk.bf16.mxu0 %vm3222_vm1, %v3221_v16  ;;  %2838 = vmatpush3.bf16.msra.mxu0 %v3067_v35 }
 0xeff   :  { %2839 = vmatprep.subr.bf16.mxu0 %v3221_v16 }
 0xf02   :  { %2840 = vmatpush3.bf16.msra.mxu0 %v3068_v46  ;;  %v2554_v46 = vld [vmem:[%s3823_s2] ss:$0 sm:$0xff] }
 0xf03   :  { %2853 = vmatprep.subr.bf16.mxu0 %v3221_v16 }
 0xf21   :  { %v1803_v19 = vpop.xlane.xlu1 %1802 }
 0xf22   :  { %3155 = vrcp.f32 %v1803_v19 }
 0xf25   :  { %v3025_v20 = vpop.permute.xlu1 %3024 }
 0xf26   :  { %v3027_v21 = vunpack.i.h.bf16 %v3025_v20  ;;  %v3026_v22 = vunpack.i.l.bf16 %v3025_v20 }
 0xf28   :  { %v1527_v23 = vpack.c.bf16 %v3027_v21, %v3026_v22 }
 0xf2a   :  { %2832 = vmatpush3.bf16.msra.mxu1 %v1527_v23 }
 0xf2b   :  { %2845 = vmatprep.subr.bf16.mxu1 %v3221_v16 }
 0xf2c   :  { %v3156_v26 = vpop.eup %3155 }
 0xf2d   :  { %v1819_v29 = vmul.f32 %v3156_v26, %v3144_v58  ;;  %v3070_v26 = vld [vmem:[%s3820_s6 + $0x8] sm:$0xff]  }
 0xf2f   :  { %v1823_v30 = vpack.c.bf16 %v1819_v29, %v1818_v27  ;;  %v3071_v27 = vld [vmem:[%s3821_s28] sm:$0xff]   ;;  %v3072_v29 = vld [vmem:[%s3821_s28 + $0x8] sm:$0xff]  }
 0xf31   :  { %2834 = vmatmul.mubr.msk.bf16.vlgmr.msra.gmra.mrb[44].mxu1 %vm638_vm3, %v1823_v30  ;;  %v3073_v30 = vld [vmem:[%s3821_s28 + $0x10] sm:$0xff]  }
 0xf32   :  { %2849 = vmatprep.mubr.msk.bf16.mxu1 %vm3222_vm1, %v3221_v16  ;;  %2846 = vmatpush3.bf16.msra.mxu1 %v3069_v25 }
 0xf33   :  { %2847 = vmatprep.subr.bf16.mxu1 %v3221_v16 }
 0xf36   :  { %2848 = vmatpush3.bf16.msra.mxu1 %v3070_v26 }
 0xf37   :  { %2873 = vmatprep.subr.bf16.mxu1 %v3221_v16 }
 0xf52   :  { %v1861_v31 = vpop.f32.mrb[44].mxu0 }
 0xf53   :  { %v2817_v32 = vpop.f32.mrb[45].mxu0 }
 0xf54   :  { %v1864_v33 = vpop.f32.mrb[46].mxu0  ;;  %v3075_v32 = vld [vmem:[%s3821_s28 + $0x20] sm:$0xff]  }
 0xf55   :  { %v2818_v34 = vpop.f32.mrb[47].mxu0 }
 0xfcf   :  { %v1905_v36 = vpop.f32.mrb[40].mxu1 }
 0xfd0   :  { %v1949_v37 = vpop.f32.mrb[48].mxu0  ;;  %v2823_v38 = vpop.f32.mrb[41].mxu1 }
 0xfd1   :  { %v2829_v39 = vpop.f32.mrb[49].mxu0  ;;  %v1908_v40 = vpop.f32.mrb[42].mxu1 }
 0xfd2   :  { %v3028_v41 = vpack.i.bf16 %v1908_v40, %v1905_v36  ;;  %v1952_v42 = vpop.f32.mrb[50].mxu0  ;;  %v2824_v43 = vpop.f32.mrb[43].mxu1 }
 0xfd3   :  { %v3033_v44 = vpack.i.bf16 %v1952_v42, %v1949_v37  ;;  %v2830_v45 = vpop.f32.mrb[51].mxu0  ;;  %v2553_v42 = vld [vmem:[%s3822_s1] ss:$0 sm:$0xff] }
 0xfd4   :  { %3029 = vrot.lane.b32.xlu1 %v3028_v41, %s3226_s9 }
 0xfd5   :  { %3034 = vrot.lane.b32.xlu0 %v3033_v44, %s3227_s17 }
0x1004   :  { %v1993_v47 = vpop.f32.mrb[44].mxu1 }
0x1005   :  { %v2835_v48 = vpop.f32.mrb[45].mxu1 }
0x1006   :  { %v1996_v50 = vpop.f32.mrb[46].mxu1 }
0x1007   :  { %v3038_v51 = vpack.i.bf16 %v1996_v50, %v1993_v47  ;;  %v2836_v52 = vpop.f32.mrb[47].mxu1 }
0x1008   :  { %v3077_v52 = vld [vmem:[%s3821_s28 + $0x30] sm:$0xff]  }
0x1009   :  { %3039 = vrot.lane.b32.xlu1 %v3038_v51, %s3228_s21 }
0x1046   :  { %v3030_v53 = vpop.permute.xlu1 %3029 }
0x1047   :  { %v3035_v54 = vpop.permute.xlu0 %3034  ;;  %v3032_v55 = vunpack.i.h.bf16 %v3030_v53  ;;  %v3031_v56 = vunpack.i.l.bf16 %v3030_v53  ;;  %v3078_v53 = vld [vmem:[%s3821_s28 + $0x38] sm:$0xff]  }
0x1048   :  { %v3037_v57 = vunpack.i.h.bf16 %v3035_v54  ;;  %v3036_v58 = vunpack.i.l.bf16 %v3035_v54  ;;  %v2555_v54 = vld [vmem:[%s3824_s7] ss:$0 sm:$0xff] }
0x1049   :  { %v2025_v59 = vsel %vm433_vm2, %v1864_v33, %v3032_v55  ;;  %v2024_v60 = vsel %vm433_vm2, %v1861_v31, %v3031_v56  ;;  %v3074_v31 = vld [vmem:[%s3821_s28 + $0x18] sm:$0xff]   ;;  %v3076_v33 = vld [vmem:[%s3821_s28 + $0x28] sm:$0xff]  }
0x104a   :  { %v2026_v3 = vsel %vm638_vm3, %v2024_v60, %v3036_v58  ;;  %v2027_v4 = vsel %vm638_vm3, %v2025_v59, %v3037_v57 }
0x107b   :  { %v3040_v61 = vpop.permute.xlu1 %3039 }
0x107c   :  { %v3042_v62 = vunpack.i.h.bf16 %v3040_v61  ;;  %v3041_v63 = vunpack.i.l.bf16 %v3040_v61 }
0x107e   :  { %v2029_v5 = vsel %vm935_vm4, %v2027_v4, %v3042_v62  ;;  %v2028_v49 = vsel %vm935_vm4, %v2026_v3, %v3041_v63  ;;  %v2559_v3 = vld [vmem:[%s3825_s10] ss:$0 sm:$0xff] }
0x107f   :  { %v2030_v7 = vpack.c.bf16 %v2029_v5, %v2028_v49 }
0x1081   :  { %2842 = vmatmul.mubr.msk.bf16.vlgmr.msra.gmra.mrb[52].mxu0 %vm142_vm0, %v2030_v7 }
0x1082   :  { %2869 = vmatprep.mubr.msk.bf16.mxu0 %vm3222_vm1, %v3221_v16  ;;  %2854 = vmatpush3.bf16.msra.mxu0 %v3071_v27 }
0x1083   :  { %2855 = vmatprep.subr.bf16.mxu0 %v3221_v16 }
0x1086   :  { %2856 = vmatpush3.bf16.msra.mxu0 %v3072_v29 }
0x1087   :  { %2857 = vmatprep.subr.bf16.mxu0 %v3221_v16 }
0x108a   :  { %2858 = vmatpush3.bf16.msra.mxu0 %v3073_v30  ;;  %v2568_v30 = vld [vmem:[%s3826_s11] ss:$0 sm:$0xff] }
0x108b   :  { %2859 = vmatprep.subr.bf16.mxu0 %v3221_v16 }
0x108e   :  { %2860 = vmatpush3.bf16.msra.mxu0 %v3074_v31 }
0x108f   :  { %2861 = vmatprep.subr.bf16.mxu0 %v3221_v16 }
0x1092   :  { %2862 = vmatpush3.bf16.msra.mxu0 %v3075_v32 }
0x1093   :  { %2863 = vmatprep.subr.bf16.mxu0 %v3221_v16 }
0x1096   :  { %2864 = vmatpush3.bf16.msra.mxu0 %v3076_v33 }
0x1097   :  { %2865 = vmatprep.subr.bf16.mxu0 %v3221_v16 }
0x109a   :  { %2866 = vmatpush3.bf16.msra.mxu0 %v3077_v52 }
0x109b   :  { %2867 = vmatprep.subr.bf16.mxu0 %v3221_v16 }
0x109e   :  { %2868 = vmatpush3.bf16.msra.mxu0 %v3078_v53 }
0x1154   :  { %v2091_v12 = vpop.f32.mrb[52].mxu0 }
0x1155   :  { %v2092_v13 = vadd.f32 %v2549_v10, %v2091_v12  ;;  %v2843_v14 = vpop.f32.mrb[53].mxu0 }
0x1156   :  { %v2094_v15 = vpop.f32.mrb[54].mxu0 }
0x1157   :  { %v3733_v2 = vadd.f32 %v2092_v13, %v3597_v6  ;;  %v2095_v8 = vadd.f32 %v2549_v10, %v2094_v15  ;;  %v2844_v17 = vpop.f32.mrb[55].mxu0 }
0x1159   :  { %v3736_v0 = vadd.f32 %v2095_v8, %v3600_v9  ;;  %v2102_v11 = vsel %vm142_vm0, %v3733_v2, 0.0 }
0x115a   :  { %2103 = vadd.xlane.f32.xlu0 %v2102_v11 }
0x115b   :  { %v2105_v18 = vsel %vm142_vm0, %v3736_v0, 0.0 }
0x115c   :  { %2106 = vadd.xlane.f32.xlu1 %v2105_v18 }
0x11e7   :  { %v2104_v28 = vpop.xlane.xlu0 %2103 }
0x11e8   :  { %v2108_v1 = vmul.f32 0.03125, %v2104_v28 }
0x11e9   :  { %v2107_v24 = vpop.xlane.xlu1 %2106 }
0x11ea   :  { %v2110_v6 = vsub.f32 %v3733_v2, %v2108_v1  ;;  %v2109_v19 = vmul.f32 0.03125, %v2107_v24 }
0x11ec   :  { %v2111_v9 = vsub.f32 %v3736_v0, %v2109_v19  ;;  %v2112_v20 = vmul.f32 %v2110_v6, %v2110_v6 }
0x11ee   :  { %v2114_v21 = vsel %vm142_vm0, %v2112_v20, 0.0  ;;  %v2113_v22 = vmul.f32 %v2111_v9, %v2111_v9  ;;  %v3080_v20 = vld [vmem:[%s3389_s12 + $0x8] sm:$0xff]  }
0x11ef   :  { %2115 = vadd.xlane.f32.xlu0 %v2114_v21 }
0x11f0   :  { %v2117_v23 = vsel %vm142_vm0, %v2113_v22, 0.0 }
0x11f3   :  { %2118 = vadd.xlane.f32.xlu0 %v2117_v23 }
0x127c   :  { %v2116_v34 = vpop.xlane.xlu0 %2115 }
0x127d   :  { %v2120_v35 = vmul.f32 0.03125, %v2116_v34 }
0x127f   :  { %v2122_v36 = vadd.f32 1e-05, %v2120_v35  ;;  %v2569_v35 = vld [vmem:[%s3384_s4] ss:$0 sm:$0xff] }
0x1280   :  { %v2119_v37 = vpop.xlane.xlu0 %2118 }
0x1281   :  { %3157 = vrsqrt.f32 %v2122_v36  ;;  %v2121_v38 = vmul.f32 0.03125, %v2119_v37 }
0x1283   :  { %v2123_v39 = vadd.f32 1e-05, %v2121_v38 }
0x1285   :  { %3159 = vrsqrt.f32 %v2123_v39  ;;  %v2570_v39 = vld [vmem:[%s3394_s20] ss:$0 sm:$0xff] }
0x128b   :  { %v3158_v40 = vpop.eup %3157 }
0x128c   :  { %v2126_v41 = vmul.f32 %v3158_v40, %v2110_v6 }
0x128e   :  { %v2134_v44 = vmul.f32 %v2553_v42, %v2126_v41 }
0x128f   :  { %v3160_v43 = vpop.eup %3159 }
0x1290   :  { %v2127_v45 = vmul.f32 %v3160_v43, %v2111_v9  ;;  %v2142_v48 = vadd.f32 %v2554_v46, %v2134_v44 }
0x1292   :  { %v2135_v47 = vmul.f32 %v2553_v42, %v2127_v45 }
0x1294   :  { %v2143_v50 = vadd.f32 %v2554_v46, %v2135_v47 }
0x1296   :  { %v2144_v51 = vpack.c.bf16 %v2143_v50, %v2142_v48 }
0x1298   :  { %2850 = vmatmul.mubr.msk.bf16.vlgmr.msra.gmra.mrb[48].mxu1 %vm142_vm0, %v2144_v51 }
0x1299   :  { %2877 = vmatprep.mubr.msk.bf16.mxu1 %vm3222_vm1, %v3221_v16 }
0x136b   :  { %v2205_v55 = vpop.f32.mrb[48].mxu1 }
0x136c   :  { %v2206_v56 = vadd.f32 %v2555_v54, %v2205_v55  ;;  %v2851_v57 = vpop.f32.mrb[49].mxu1 }
0x136d   :  { %v2208_v58 = vpop.f32.mrb[50].mxu1 }
0x136e   :  { %v2209_v59 = vadd.f32 %v2555_v54, %v2208_v58  ;;  %v2852_v60 = vpop.f32.mrb[51].mxu1  ;;  %v2212_v61 = vmax.f32 %v2206_v56, 0.0 }
0x1370   :  { %v2213_v62 = vmax.f32 %v2209_v59, 0.0 }
0x1372   :  { %v2214_v63 = vpack.c.bf16 %v2213_v62, %v2212_v61 }
0x1374   :  { %2870 = vmatmul.mubr.bf16.vlgmr.msra.gmra.mrb[56].mxu0 %v2214_v63 }
0x1447   :  { %v2320_v4 = vpop.f32.mrb[56].mxu0 }
0x1448   :  { %v2321_v5 = vadd.f32 %v2559_v3, %v2320_v4  ;;  %v2871_v49 = vpop.f32.mrb[57].mxu0 }
0x1449   :  { %v2323_v7 = vpop.f32.mrb[58].mxu0 }
0x144a   :  { %v2324_v10 = vadd.f32 %v2559_v3, %v2323_v7  ;;  %v2872_v12 = vpop.f32.mrb[59].mxu0  ;;  %v2327_v13 = vadd.f32 %v2321_v5, %v3733_v2 }
0x144c   :  { %v2331_v14 = vsel %vm142_vm0, %v2327_v13, 0.0  ;;  %v2328_v15 = vadd.f32 %v2324_v10, %v3736_v0  ;;  %v3079_v0 = vld [vmem:[%s3389_s12] sm:$0xff]   ;;  %s3229_s12 = smov [#allocation2]  }
0x144d   :  { %2332 = vadd.xlane.f32.xlu0 %v2331_v14  ;;  %2874 = vmatpush3.bf16.msra.mxu1 %v3079_v0  ;;  %s2449_s15 = sshll.u32 %s3229_s12, 4  ;;  %s2450_s15 = int_to_ptr.vmem [resolvable:$true] %s2449_s15 }
0x144e   :  { %v2334_v8 = vsel %vm142_vm0, %v2328_v15, 0.0  ;;  %2875 = vmatprep.subr.bf16.mxu1 %v3221_v16  ;;  %s3165_s4 = scalar_lea.vmem %s2450_s15, 256  ;;  %p3170_p1 = scmp.lt.s32.totalorder %s2450_s15, %s2450_s15 }
0x144f   :  { %2335 = vadd.xlane.f32.xlu1 %v2334_v8  ;;  %p3166_p0 = scmp.ne.s32.totalorder %s2450_s15, %s3165_s4  ;;  %p3171_p2 = scmp.lt.s32.totalorder %s3165_s4, %s3165_s4 }
0x1451   :  { %2876 = vmatpush3.bf16.msra.mxu1 %v3080_v20  ;;  %p3172_p3 = por %p3171_p2, %p3170_p1 }
0x1453   :  { %p3173_p4 = pnand %p3172_p3, %p3166_p0 }
0x14da   :  { %v2333_v17 = vpop.xlane.xlu0 %2332 }
0x14db   :  { %v2337_v11 = vmul.f32 0.03125, %v2333_v17 }
0x14dc   :  { %v2336_v18 = vpop.xlane.xlu1 %2335 }
0x14dd   :  { %v2339_v28 = vsub.f32 %v2327_v13, %v2337_v11  ;;  %v2338_v1 = vmul.f32 0.03125, %v2336_v18 }
0x14df   :  { %v2340_v24 = vsub.f32 %v2328_v15, %v2338_v1  ;;  %v2341_v6 = vmul.f32 %v2339_v28, %v2339_v28 }
0x14e1   :  { %v2343_v19 = vsel %vm142_vm0, %v2341_v6, 0.0  ;;  %v2342_v2 = vmul.f32 %v2340_v24, %v2340_v24 }
0x14e2   :  { %2344 = vadd.xlane.f32.xlu0 %v2343_v19 }
0x14e3   :  { %v2346_v9 = vsel %vm142_vm0, %v2342_v2, 0.0 }
0x14e4   :  { %2347 = vadd.xlane.f32.xlu1 %v2346_v9 }
0x156f   :  { %v2345_v21 = vpop.xlane.xlu0 %2344 }
0x1570   :  { %v2349_v22 = vmul.f32 0.03125, %v2345_v21 }
0x1571   :  { %v2348_v23 = vpop.xlane.xlu1 %2347 }
0x1572   :  { %v2351_v25 = vadd.f32 1e-05, %v2349_v22  ;;  %v2350_v26 = vmul.f32 0.03125, %v2348_v23 }
0x1574   :  { %3161 = vrsqrt.f32 %v2351_v25  ;;  %v2352_v27 = vadd.f32 1e-05, %v2350_v26 }
0x1576   :  { %3163 = vrsqrt.f32 %v2352_v27 }
0x157e   :  { %v3162_v29 = vpop.eup %3161 }
0x157f   :  { %v2355_v31 = vmul.f32 %v3162_v29, %v2339_v28 }
0x1580   :  { %v3164_v32 = vpop.eup %3163 }
0x1581   :  { %v2363_v33 = vmul.f32 %v2568_v30, %v2355_v31  ;;  %v2356_v34 = vmul.f32 %v3164_v32, %v2340_v24 }
0x1583   :  { %v2364_v36 = vmul.f32 %v2568_v30, %v2356_v34  ;;  %v2371_v16 = vadd.f32 %v2569_v35, %v2363_v33 }
0x1585   :  { %v2372_v37 = vadd.f32 %v2569_v35, %v2364_v36 }
0x1587   :  { %v2373_v38 = vpack.c.bf16 %v2372_v37, %v2371_v16 }
0x1589   :  { %2878 = vmatmul.mubr.msk.bf16.vlgmr.msra.gmra.mrb[52].mxu1 %vm142_vm0, %v2373_v38 }
0x165c   :  { %v2434_v40 = vpop.f32.mrb[52].mxu1 }
0x165d   :  { %v2435_v41 = vadd.f32 %v2570_v39, %v2434_v40  ;;  %v2879_v42 = vpop.f32.mrb[53].mxu1 }
0x165e   :  { %v2437_v43 = vpop.f32.mrb[54].mxu1 }
0x165f   :  { %2442 = vst.msk [vmem:[#allocation2] sm:$0xff] %vm2441_vm5, %v2435_v41  ;;  %v2438_v44 = vadd.f32 %v2570_v39, %v2437_v43  ;;  %v2880_v45 = vpop.f32.mrb[55].mxu1 }
0x1661   :  { %2443 = vst.msk [vmem:[#allocation2 + $0x8] sm:$0xff] %vm2441_vm5, %v2438_v44 }
0x1662   :  { %3176 = shalt.err (!%p3173_p4)
}
0x1663   :  { %s3177_s20 = scalar_lea.hbm %s3399_s27, 256 }
0x1664   :  { %p3178_p5 = scmp.ne.s32.totalorder %s3399_s27, %s3177_s20  ;;  %p3181_p6 = scmp.lt.u32.totalorder %s3177_s20, %s3399_s27 }
0x1666   :  { %p3183_p7 = pnand %p3181_p6, %p3178_p5 }
0x1668   :  { %3186 = shalt.err (!%p3183_p7)
}
0x1669   :  { %s3230_s16 = smov 128  }
0x166a   :  { %2455 = dma.vmem_to_hbm [thread:$0]  %s2450_s15, 256, %s3399_s27, [#allocation3], %s3230_s16, %s3230_s16, %s3226_s9  }
0x166b   :  { %3187 = dma.done.wait [#allocation3], 256  }
0x166c   :  { %3188 = vsyncadd [#allocation3], 4294967040 }
0x166d   :  { %2459 = vsyncpa [#allocation3], 1 }

</bundles_post_ra>
